<compile_context>
chip_gen: v5e
topology: v5e:2x2
jax: 0.10.0
libtpu: 0.0.40
codegen_flags: <defaults>
</compile_context>

<pallas_src>
import functools
import math
from typing import NamedTuple, Optional

import jax
import jax.numpy as jnp
from jax.experimental import pallas as pl
from jax.experimental.pallas import tpu as pltpu

# ----------------------------- tiny BERT config -----------------------------
VOCAB = 100
HIDDEN = 32
HEADS = 2
HEAD_DIM = HIDDEN // HEADS
INTER = 64
LAYERS = 2
MAX_POS = 16
TYPE_VOCAB = 2
LN_EPS = 1e-12
GELU_C = 0.7978845608028654  # sqrt(2/pi)


# ------------------------------ fused kernel --------------------------------
def _encoder_kernel(
    emb_ref, bias_ref, eln_g_ref, eln_b_ref,
    wqkv_ref, bqkv_ref, wo_ref, bo_ref, ln1_g_ref, ln1_b_ref,
    wi_ref, bi_ref, wo2_ref, bo2_ref, ln2_g_ref, ln2_b_ref,
    out_ref,
    *, n_batch, seq_len, heads, head_dim, eps,
):
    """One grid step = (batch block, transformer layer).

    out_ref doubles as the VMEM-resident activation buffer: its block index is
    constant along the layer ("arbitrary") axis, so it is only written back to
    HBM once per batch block.
    """
    layer = pl.program_id(1)
    hidden = heads * head_dim
    tokens = n_batch * seq_len

    def layernorm(y, g, b):
        mu = jnp.mean(y, axis=-1, keepdims=True)
        var = jnp.mean((y - mu) * (y - mu), axis=-1, keepdims=True)
        return (y - mu) * jax.lax.rsqrt(var + eps) * g + b

    # Layer 0: embedding LayerNorm straight into the resident activation buffer.
    @pl.when(layer == 0)
    def _():
        out_ref[...] = layernorm(
            emb_ref[...].astype(jnp.float32), eln_g_ref[...], eln_b_ref[...]
        ).astype(out_ref.dtype)

    x = out_ref[...].astype(jnp.float32)                        # (T, H)

    # ---- fused QKV projection: one (H, 3H) matmul instead of three ----
    qkv = (jnp.dot(x, wqkv_ref[0], preferred_element_type=jnp.float32)
           + bqkv_ref[0])                                       # (T, 3H)
    qkv3 = qkv.reshape(n_batch, seq_len, 3 * hidden)            # (B, L, 3H)
    key_bias = bias_ref[...].reshape(n_batch, seq_len, seq_len)  # (B, Lq, Lk)

    scale = 1.0 / math.sqrt(head_dim)
    wo = wo_ref[0]                                              # (H, H)
    attn = bo_ref[0]                                            # (1, H) -> bcast
    for h in range(heads):                                      # static unroll
        lo = h * head_dim
        qh = qkv3[:, :, lo:lo + head_dim] * scale               # scale folded in
        kh = qkv3[:, :, hidden + lo:hidden + lo + head_dim]
        vh = qkv3[:, :, 2 * hidden + lo:2 * hidden + lo + head_dim]
        s = jnp.einsum("bqd,bkd->bqk", qh, kh,
                       preferred_element_type=jnp.float32) + key_bias
        s = s - jnp.max(s, axis=-1, keepdims=True)
        p = jnp.exp(s)
        p = p * pl.reciprocal(jnp.sum(p, axis=-1, keepdims=True), approx=True)
        ctx_h = jnp.einsum("bqk,bkd->bqd", p, vh,
                           preferred_element_type=jnp.float32)  # (B, L, dh)
        # fold this head's slice of the output projection directly
        attn = attn + jnp.dot(ctx_h.reshape(tokens, head_dim),
                              wo[lo:lo + head_dim, :],
                              preferred_element_type=jnp.float32)

    x = layernorm(attn + x, ln1_g_ref[0], ln1_b_ref[0])

    # ---- feed forward ----
    h1 = jnp.dot(x, wi_ref[0], preferred_element_type=jnp.float32) + bi_ref[0]
    # TODO(synk): HF BERT uses erf-based gelu; tanh approximation kept for
    # guaranteed Mosaic lowering (deviation ~1e-3).
    h1 = 0.5 * h1 * (1.0 + jnp.tanh(GELU_C * (h1 + 0.044715 * h1 * h1 * h1)))
    ffn = jnp.dot(h1, wo2_ref[0], preferred_element_type=jnp.float32) + bo2_ref[0]
    x = layernorm(ffn + x, ln2_g_ref[0], ln2_b_ref[0])

    out_ref[...] = x.astype(out_ref.dtype)


# ------------------------------ encoder wrapper ------------------------------
def bert_encoder(params, input_ids, attention_mask=None):
    """input_ids: (B, L) int32 -> pooler_output (B, HIDDEN) = CLS hidden state."""
    B, L = input_ids.shape
    T = B * L

    # Embedding gathers stay in plain JAX (no clean Pallas gather at this size).
    # TODO(synk): token_type_ids hardcoded to 0; positions capped at MAX_POS.
    emb = (
        params["word_emb"][input_ids]
        + params["pos_emb"][:L][None, :, :]
        + params["type_emb"][0][None, None, :]
    ).reshape(T, HIDDEN).astype(jnp.float32)

    if attention_mask is None:
        attention_mask = jnp.ones((B, L), jnp.float32)
    # Additive key bias, replicated per query row -> lane/sublane friendly (T, L).
    bias = (attention_mask.astype(jnp.float32) - 1.0) * 1e9            # (B, L)
    bias = jnp.broadcast_to(bias[:, None, :], (B, L, L)).reshape(T, L)  # (T, L)

    # Batch blocks: a leading "parallel" grid axis (usable by v7x's 2nd core).
    nb = 2 if (B % 2 == 0 and B >= 2) else 1
    t_blk = T // nb
    b_blk = B // nb

    kernel = functools.partial(
        _encoder_kernel, n_batch=b_blk, seq_len=L,
        heads=HEADS, head_dim=HEAD_DIM, eps=LN_EPS,
    )

    act_spec = pl.BlockSpec((t_blk, HIDDEN), lambda b, l: (b, 0))
    bias_spec = pl.BlockSpec((t_blk, L), lambda b, l: (b, 0))

    def const2(shape):
        return pl.BlockSpec(shape, lambda b, l: (0, 0))

    def per_layer(shape):
        return pl.BlockSpec((1,) + shape, lambda b, l: (l, 0, 0))

    hidden = pl.pallas_call(
        kernel,
        out_shape=jax.ShapeDtypeStruct((T, HIDDEN), jnp.float32),
        grid=(nb, LAYERS),
        in_specs=[
            act_spec,                              # summed embeddings
            bias_spec,                             # additive attention bias
            const2((1, HIDDEN)),                   # emb_ln_g
            const2((1, HIDDEN)),                   # emb_ln_b
            per_layer((HIDDEN, 3 * HIDDEN)),       # wqkv
            per_layer((1, 3 * HIDDEN)),            # bqkv
            per_layer((HIDDEN, HIDDEN)),           # wo
            per_layer((1, HIDDEN)),                # bo
            per_layer((1, HIDDEN)),                # ln1_g
            per_layer((1, HIDDEN)),                # ln1_b
            per_layer((HIDDEN, INTER)),            # wi
            per_layer((1, INTER)),                 # bi
            per_layer((INTER, HIDDEN)),            # wo2
            per_layer((1, HIDDEN)),                # bo2
            per_layer((1, HIDDEN)),                # ln2_g
            per_layer((1, HIDDEN)),                # ln2_b
        ],
        out_specs=act_spec,
        compiler_params=pltpu.CompilerParams(
            dimension_semantics=("parallel", "arbitrary")),
    )(
        emb, bias,
        params["emb_ln_g"], params["emb_ln_b"],
        params["wqkv"], params["bqkv"], params["wo"], params["bo"],
        params["ln1_g"], params["ln1_b"],
        params["wi"], params["bi"], params["wo2"], params["bo2"],
        params["ln2_g"], params["ln2_b"],
    )

    return hidden.reshape(B, L, HIDDEN)[:, 0, :]   # DPR pooler_output == CLS


# ----------------------------- parameter setup ------------------------------
def init_bert_params(key):
    keys = jax.random.split(key, 7)

    def normal(k, shape):
        return 0.02 * jax.random.normal(k, shape, jnp.float32)

    return {
        "word_emb": normal(keys[0], (VOCAB, HIDDEN)),
        "pos_emb": normal(keys[1], (MAX_POS, HIDDEN)),
        "type_emb": normal(keys[2], (TYPE_VOCAB, HIDDEN)),
        "emb_ln_g": jnp.ones((1, HIDDEN), jnp.float32),
        "emb_ln_b": jnp.zeros((1, HIDDEN), jnp.float32),
        # layer-stacked weights (selected per grid step via index_map)
        "wqkv": normal(keys[3], (LAYERS, HIDDEN, 3 * HIDDEN)),
        "bqkv": jnp.zeros((LAYERS, 1, 3 * HIDDEN), jnp.float32),
        "wo": normal(keys[4], (LAYERS, HIDDEN, HIDDEN)),
        "bo": jnp.zeros((LAYERS, 1, HIDDEN), jnp.float32),
        "ln1_g": jnp.ones((LAYERS, 1, HIDDEN), jnp.float32),
        "ln1_b": jnp.zeros((LAYERS, 1, HIDDEN), jnp.float32),
        "wi": normal(keys[5], (LAYERS, HIDDEN, INTER)),
        "bi": jnp.zeros((LAYERS, 1, INTER), jnp.float32),
        "wo2": normal(keys[6], (LAYERS, INTER, HIDDEN)),
        "bo2": jnp.zeros((LAYERS, 1, HIDDEN), jnp.float32),
        "ln2_g": jnp.ones((LAYERS, 1, HIDDEN), jnp.float32),
        "ln2_b": jnp.zeros((LAYERS, 1, HIDDEN), jnp.float32),
    }


# ----------------------------- DPR bi-encoder --------------------------------
class DPRBiEncoderOutput(NamedTuple):
    question_pooler_output: Optional[jnp.ndarray] = None
    question_hidden_states: Optional[tuple] = None
    question_attentions: Optional[tuple] = None
    context_pooler_output: Optional[jnp.ndarray] = None
    context_hidden_states: Optional[tuple] = None
    context_attentions: Optional[tuple] = None


def dpr_biencoder_forward(question_params, context_params,
                          question_input_ids, question_attention_mask,
                          context_input_ids, context_attention_mask):
    q_pooled = bert_encoder(question_params, question_input_ids,
                            question_attention_mask)          # (N, d)
    c_pooled = bert_encoder(context_params, context_input_ids,
                            context_attention_mask)           # (N*M, d)
    # hidden_states / attentions are None (output_hidden_states=False default).
    return DPRBiEncoderOutput(
        question_pooler_output=q_pooled,
        context_pooler_output=c_pooled,
    )


dpr_biencoder_forward_jit = jax.jit(dpr_biencoder_forward)


# --------------------------- pure-JAX reference ------------------------------
def bert_encoder_ref(params, input_ids, attention_mask):
    B, L = input_ids.shape
    x = (params["word_emb"][input_ids]
         + params["pos_emb"][:L][None, :, :]
         + params["type_emb"][0][None, None, :]).astype(jnp.float32)

    def ln(y, g, b):
        mu = y.mean(-1, keepdims=True)
        var = ((y - mu) ** 2).mean(-1, keepdims=True)
        return (y - mu) / jnp.sqrt(var + LN_EPS) * g.reshape(-1) + b.reshape(-1)

    x = ln(x, params["emb_ln_g"], params["emb_ln_b"])
    bias = (attention_mask.astype(jnp.float32) - 1.0) * 1e9    # (B, L)
    for l in range(LAYERS):
        qkv = x @ params["wqkv"][l] + params["bqkv"][l]
        q, k, v = jnp.split(qkv, 3, axis=-1)

        def heads(t):
            return t.reshape(B, L, HEADS, HEAD_DIM).transpose(0, 2, 1, 3)

        s = (jnp.einsum("bhqd,bhkd->bhqk", heads(q), heads(k))
             / math.sqrt(HEAD_DIM)) + bias[:, None, None, :]
        p = jax.nn.softmax(s, axis=-1)
        ctx = jnp.einsum("bhqk,bhkd->bhqd", p, heads(v))
        ctx = ctx.transpose(0, 2, 1, 3).reshape(B, L, HIDDEN)
        attn = ctx @ params["wo"][l] + params["bo"][l]
        x = ln(attn + x, params["ln1_g"][l], params["ln1_b"][l])
        h = x @ params["wi"][l] + params["bi"][l]
        h = 0.5 * h * (1.0 + jnp.tanh(GELU_C * (h + 0.044715 * h ** 3)))
        f = h @ params["wo2"][l] + params["bo2"][l]
        x = ln(f + x, params["ln2_g"][l], params["ln2_b"][l])
    return x[:, 0, :]


# ----------------------------------- main ------------------------------------
if __name__ == "__main__":
    key = jax.random.PRNGKey(0)
    k_qp, k_cp, k_qi, k_ci = jax.random.split(key, 4)

    question_params = init_bert_params(k_qp)
    context_params = init_bert_params(k_cp)

    N, M, L = 2, 2, 8  # N questions, M passages per question, seq length L
    question_ids = jax.random.randint(k_qi, (N, L), 0, VOCAB, dtype=jnp.int32)
    context_ids = jax.random.randint(k_ci, (N * M, L), 0, VOCAB, dtype=jnp.int32)
    question_mask = jnp.ones((N, L), jnp.float32)
    context_mask = jnp.ones((N * M, L), jnp.float32).at[:, -1].set(0.0)  # pad demo

    out = dpr_biencoder_forward_jit(question_params, context_params,
                                    question_ids, question_mask,
                                    context_ids, context_mask)
    jax.block_until_ready(out.question_pooler_output)
    jax.block_until_ready(out.context_pooler_output)

    assert out.question_pooler_output.shape == (N, HIDDEN)
    assert out.context_pooler_output.shape == (N * M, HIDDEN)
    assert bool(jnp.all(jnp.isfinite(out.question_pooler_output)))
    assert bool(jnp.all(jnp.isfinite(out.context_pooler_output)))

    # Numerical check against a pure-JAX reference (approx-reciprocal softmax
    # and MXU dot precision give ~1e-3 deviations at most).
    q_ref = bert_encoder_ref(question_params, question_ids, question_mask)
    c_ref = bert_encoder_ref(context_params, context_ids, context_mask)
    assert bool(jnp.allclose(out.question_pooler_output, q_ref,
                             atol=3e-2, rtol=3e-2))
    assert bool(jnp.allclose(out.context_pooler_output, c_ref,
                             atol=3e-2, rtol=3e-2))

    print("KERNEL_OK")
</pallas_src>

<mosaic_0001>
module attributes {stable_mosaic.version = 11 : i64} {
  func.func @_encoder_kernel(%arg0: i32, %arg1: i32, %arg2: memref<16x32xf32, #tpu.memory_space<vmem>>, %arg3: memref<16x8xf32, #tpu.memory_space<vmem>>, %arg4: memref<1x32xf32, #tpu.memory_space<vmem>>, %arg5: memref<1x32xf32, #tpu.memory_space<vmem>>, %arg6: memref<1x32x96xf32, #tpu.memory_space<vmem>>, %arg7: memref<1x1x96xf32, #tpu.memory_space<vmem>>, %arg8: memref<1x32x32xf32, #tpu.memory_space<vmem>>, %arg9: memref<1x1x32xf32, #tpu.memory_space<vmem>>, %arg10: memref<1x1x32xf32, #tpu.memory_space<vmem>>, %arg11: memref<1x1x32xf32, #tpu.memory_space<vmem>>, %arg12: memref<1x32x64xf32, #tpu.memory_space<vmem>>, %arg13: memref<1x1x64xf32, #tpu.memory_space<vmem>>, %arg14: memref<1x64x32xf32, #tpu.memory_space<vmem>>, %arg15: memref<1x1x32xf32, #tpu.memory_space<vmem>>, %arg16: memref<1x1x32xf32, #tpu.memory_space<vmem>>, %arg17: memref<1x1x32xf32, #tpu.memory_space<vmem>>, %arg18: memref<16x32xf32, #tpu.memory_space<vmem>>) attributes {dimension_semantics = [#tpu.dimension_semantics<parallel>, #tpu.dimension_semantics<arbitrary>], iteration_bounds = array<i64: 2, 2>, scalar_prefetch = 0 : i64, scratch_operands = 0 : i64, tpu.core_type = #tpu.core_type<tc>, window_params = [{transform_indices = @transform_0, window_bounds = array<i64: 16, 32>}, {transform_indices = @transform_1, window_bounds = array<i64: 16, 8>}, {pipeline_mode = #tpu.pipeline_mode<synchronous>, transform_indices = @transform_2, window_bounds = array<i64: 1, 32>}, {pipeline_mode = #tpu.pipeline_mode<synchronous>, transform_indices = @transform_3, window_bounds = array<i64: 1, 32>}, {transform_indices = @transform_4, window_bounds = array<i64: 1, 32, 96>}, {transform_indices = @transform_5, window_bounds = array<i64: 1, 1, 96>}, {transform_indices = @transform_6, window_bounds = array<i64: 1, 32, 32>}, {transform_indices = @transform_7, window_bounds = array<i64: 1, 1, 32>}, {transform_indices = @transform_8, window_bounds = array<i64: 1, 1, 32>}, {transform_indices = @transform_9, window_bounds = array<i64: 1, 1, 32>}, {transform_indices = @transform_10, window_bounds = array<i64: 1, 32, 64>}, {transform_indices = @transform_11, window_bounds = array<i64: 1, 1, 64>}, {transform_indices = @transform_12, window_bounds = array<i64: 1, 64, 32>}, {transform_indices = @transform_13, window_bounds = array<i64: 1, 1, 32>}, {transform_indices = @transform_14, window_bounds = array<i64: 1, 1, 32>}, {transform_indices = @transform_15, window_bounds = array<i64: 1, 1, 32>}, {transform_indices = @transform_16, window_bounds = array<i64: 16, 32>}]} {
    %c0_i32 = arith.constant 0 : i32
    %0 = arith.cmpi eq, %arg1, %c0_i32 : i32
    %1 = arith.extui %0 : i1 to i32
    %c0_i32_0 = arith.constant 0 : i32
    %2 = arith.cmpi ne, %1, %c0_i32_0 : i32
    scf.if %2 {
      %c0_70 = arith.constant 0 : index
      %c0_71 = arith.constant 0 : index
      %149 = vector.load %arg2[%c0_70, %c0_71] : memref<16x32xf32, #tpu.memory_space<vmem>>, vector<16x32xf32>
      %c0_72 = arith.constant 0 : index
      %c0_73 = arith.constant 0 : index
      %150 = vector.load %arg4[%c0_72, %c0_73] : memref<1x32xf32, #tpu.memory_space<vmem>>, vector<1x32xf32>
      %c0_74 = arith.constant 0 : index
      %c0_75 = arith.constant 0 : index
      %151 = vector.load %arg5[%c0_74, %c0_75] : memref<1x32xf32, #tpu.memory_space<vmem>>, vector<1x32xf32>
      %cst_76 = arith.constant dense<0.000000e+00> : vector<16xf32>
      %152 = vector.multi_reduction <add>, %149, %cst_76 [1] : vector<16x32xf32> to vector<16xf32>
      %153 = vector.shape_cast %152 : vector<16xf32> to vector<16x1xf32>
      %cst_77 = arith.constant 3.200000e+01 : f32
      %154 = vector.broadcast %cst_77 : f32 to vector<16x1xf32>
      %155 = arith.divf %153, %154 : vector<16x1xf32>
      %156 = vector.broadcast %155 : vector<16x1xf32> to vector<16x32xf32>
      %157 = arith.subf %149, %156 : vector<16x32xf32>
      %158 = vector.broadcast %155 : vector<16x1xf32> to vector<16x32xf32>
      %159 = arith.subf %149, %158 : vector<16x32xf32>
      %160 = arith.mulf %157, %159 : vector<16x32xf32>
      %cst_78 = arith.constant dense<0.000000e+00> : vector<16xf32>
      %161 = vector.multi_reduction <add>, %160, %cst_78 [1] : vector<16x32xf32> to vector<16xf32>
      %162 = vector.shape_cast %161 : vector<16xf32> to vector<16x1xf32>
      %cst_79 = arith.constant 3.200000e+01 : f32
      %163 = vector.broadcast %cst_79 : f32 to vector<16x1xf32>
      %164 = arith.divf %162, %163 : vector<16x1xf32>
      %165 = vector.broadcast %155 : vector<16x1xf32> to vector<16x32xf32>
      %166 = arith.subf %149, %165 : vector<16x32xf32>
      %cst_80 = arith.constant 9.99999996E-13 : f32
      %167 = vector.broadcast %cst_80 : f32 to vector<16x1xf32>
      %168 = arith.addf %164, %167 : vector<16x1xf32>
      %169 = math.rsqrt %168 : vector<16x1xf32>
      %170 = vector.broadcast %169 : vector<16x1xf32> to vector<16x32xf32>
      %171 = arith.mulf %166, %170 : vector<16x32xf32>
      %172 = vector.broadcast %150 : vector<1x32xf32> to vector<16x32xf32>
      %173 = arith.mulf %171, %172 : vector<16x32xf32>
      %174 = vector.broadcast %151 : vector<1x32xf32> to vector<16x32xf32>
      %175 = arith.addf %173, %174 : vector<16x32xf32>
      %c0_81 = arith.constant 0 : index
      %c0_82 = arith.constant 0 : index
      %176 = vector.load %arg18[%c0_81, %c0_82] : memref<16x32xf32, #tpu.memory_space<vmem>>, vector<16x32xf32>
      tpu.vector_store %arg18[%c0_81, %c0_82], %175 {strides = array<i32>} : memref<16x32xf32, #tpu.memory_space<vmem>>, vector<16x32xf32>,
    } else {
    }
    %c0 = arith.constant 0 : index
    %c0_1 = arith.constant 0 : index
    %3 = vector.load %arg18[%c0, %c0_1] : memref<16x32xf32, #tpu.memory_space<vmem>>, vector<16x32xf32>
    %c0_2 = arith.constant 0 : index
    %c0_3 = arith.constant 0 : index
    %c0_4 = arith.constant 0 : index
    %4 = vector.load %arg6[%c0_2, %c0_3, %c0_4] : memref<1x32x96xf32, #tpu.memory_space<vmem>>, vector<1x32x96xf32>
    %5 = vector.shape_cast %4 : vector<1x32x96xf32> to vector<32x96xf32>
    %cst = arith.constant dense<0.000000e+00> : vector<16x96xf32>
    %6 = tpu.matmul %3, %5, %cst {dimension_numbers = #tpu.dot_dimension_numbers<[1], [0], [0], [1], [0, 0, 1, 1], [], []>} : vector<16x32xf32>, vector<32x96xf32>, vector<16x96xf32> -> vector<16x96xf32>
    %c0_5 = arith.constant 0 : index
    %c0_6 = arith.constant 0 : index
    %c0_7 = arith.constant 0 : index
    %7 = vector.load %arg7[%c0_5, %c0_6, %c0_7] : memref<1x1x96xf32, #tpu.memory_space<vmem>>, vector<1x1x96xf32>
    %8 = vector.shape_cast %7 : vector<1x1x96xf32> to vector<1x96xf32>
    %9 = vector.broadcast %8 : vector<1x96xf32> to vector<16x96xf32>
    %10 = arith.addf %6, %9 : vector<16x96xf32>
    %11 = vector.shape_cast %10 : vector<16x96xf32> to vector<2x8x96xf32>
    %c0_8 = arith.constant 0 : index
    %c0_9 = arith.constant 0 : index
    %12 = vector.load %arg3[%c0_8, %c0_9] : memref<16x8xf32, #tpu.memory_space<vmem>>, vector<16x8xf32>
    %13 = vector.shape_cast %12 : vector<16x8xf32> to vector<2x8x8xf32>
    %c0_10 = arith.constant 0 : index
    %c0_11 = arith.constant 0 : index
    %c0_12 = arith.constant 0 : index
    %14 = vector.load %arg8[%c0_10, %c0_11, %c0_12] : memref<1x32x32xf32, #tpu.memory_space<vmem>>, vector<1x32x32xf32>
    %15 = vector.shape_cast %14 : vector<1x32x32xf32> to vector<32x32xf32>
    %c0_13 = arith.constant 0 : index
    %c0_14 = arith.constant 0 : index
    %c0_15 = arith.constant 0 : index
    %16 = vector.load %arg9[%c0_13, %c0_14, %c0_15] : memref<1x1x32xf32, #tpu.memory_space<vmem>>, vector<1x1x32xf32>
    %17 = vector.shape_cast %16 : vector<1x1x32xf32> to vector<1x32xf32>
    %18 = vector.extract_strided_slice %11 {offsets = [0, 0, 0], sizes = [2, 8, 16], strides = [1, 1, 1]} : vector<2x8x96xf32> to vector<2x8x16xf32>
    %cst_16 = arith.constant 2.500000e-01 : f32
    %19 = vector.broadcast %cst_16 : f32 to vector<2x8x16xf32>
    %20 = arith.mulf %18, %19 : vector<2x8x16xf32>
    %21 = vector.extract_strided_slice %11 {offsets = [0, 0, 32], sizes = [2, 8, 16], strides = [1, 1, 1]} : vector<2x8x96xf32> to vector<2x8x16xf32>
    %22 = vector.extract_strided_slice %11 {offsets = [0, 0, 64], sizes = [2, 8, 16], strides = [1, 1, 1]} : vector<2x8x96xf32> to vector<2x8x16xf32>
    "tpu.trace_start"() <{level = 10 : i32, message = "bqd,bkd->bqk"}> : () -> ()
    %cst_17 = arith.constant dense<0.000000e+00> : vector<2x8x8xf32>
    %23 = tpu.matmul %20, %21, %cst_17 {dimension_numbers = #tpu.dot_dimension_numbers<[2], [2], [1], [1], [0, 0, 0, 1, 1, 1], [0], [0]>} : vector<2x8x16xf32>, vector<2x8x16xf32>, vector<2x8x8xf32> -> vector<2x8x8xf32>
    "tpu.trace_stop"() : () -> ()
    %24 = arith.addf %23, %13 : vector<2x8x8xf32>
    %cst_18 = arith.constant dense<0xFF800000> : vector<2x8xf32>
    %25 = vector.multi_reduction <maximumf>, %24, %cst_18 [2] : vector<2x8x8xf32> to vector<2x8xf32>
    %26 = vector.shape_cast %25 : vector<2x8xf32> to vector<2x8x1xf32>
    %27 = vector.broadcast %26 : vector<2x8x1xf32> to vector<2x8x8xf32>
    %28 = arith.subf %24, %27 : vector<2x8x8xf32>
    %29 = math.exp %28 : vector<2x8x8xf32>
    %cst_19 = arith.constant dense<0.000000e+00> : vector<2x8xf32>
    %30 = vector.multi_reduction <add>, %29, %cst_19 [2] : vector<2x8x8xf32> to vector<2x8xf32>
    %31 = vector.shape_cast %30 : vector<2x8xf32> to vector<2x8x1xf32>
    %32 = tpu.reciprocal %31 {approx = true} : vector<2x8x1xf32> -> vector<2x8x1xf32>
    %33 = vector.broadcast %32 : vector<2x8x1xf32> to vector<2x8x8xf32>
    %34 = arith.mulf %29, %33 : vector<2x8x8xf32>
    "tpu.trace_start"() <{level = 10 : i32, message = "bqk,bkd->bqd"}> : () -> ()
    %cst_20 = arith.constant dense<0.000000e+00> : vector<2x8x16xf32>
    %35 = tpu.matmul %34, %22, %cst_20 {dimension_numbers = #tpu.dot_dimension_numbers<[2], [1], [1], [2], [0, 0, 0, 1, 1, 2], [0], [0]>} : vector<2x8x8xf32>, vector<2x8x16xf32>, vector<2x8x16xf32> -> vector<2x8x16xf32>
    "tpu.trace_stop"() : () -> ()
    %36 = vector.shape_cast %35 : vector<2x8x16xf32> to vector<16x16xf32>
    %37 = vector.extract_strided_slice %15 {offsets = [0, 0], sizes = [16, 32], strides = [1, 1]} : vector<32x32xf32> to vector<16x32xf32>
    %cst_21 = arith.constant dense<0.000000e+00> : vector<16x32xf32>
    %38 = tpu.matmul %36, %37, %cst_21 {dimension_numbers = #tpu.dot_dimension_numbers<[1], [0], [0], [1], [0, 0, 1, 1], [], []>} : vector<16x16xf32>, vector<16x32xf32>, vector<16x32xf32> -> vector<16x32xf32>
    %39 = vector.broadcast %17 : vector<1x32xf32> to vector<16x32xf32>
    %40 = arith.addf %39, %38 : vector<16x32xf32>
    %41 = vector.extract_strided_slice %11 {offsets = [0, 0, 16], sizes = [2, 8, 16], strides = [1, 1, 1]} : vector<2x8x96xf32> to vector<2x8x16xf32>
    %cst_22 = arith.constant 2.500000e-01 : f32
    %42 = vector.broadcast %cst_22 : f32 to vector<2x8x16xf32>
    %43 = arith.mulf %41, %42 : vector<2x8x16xf32>
    %44 = vector.extract_strided_slice %11 {offsets = [0, 0, 48], sizes = [2, 8, 16], strides = [1, 1, 1]} : vector<2x8x96xf32> to vector<2x8x16xf32>
    %45 = vector.extract_strided_slice %11 {offsets = [0, 0, 80], sizes = [2, 8, 16], strides = [1, 1, 1]} : vector<2x8x96xf32> to vector<2x8x16xf32>
    "tpu.trace_start"() <{level = 10 : i32, message = "bqd,bkd->bqk"}> : () -> ()
    %cst_23 = arith.constant dense<0.000000e+00> : vector<2x8x8xf32>
    %46 = tpu.matmul %43, %44, %cst_23 {dimension_numbers = #tpu.dot_dimension_numbers<[2], [2], [1], [1], [0, 0, 0, 1, 1, 1], [0], [0]>} : vector<2x8x16xf32>, vector<2x8x16xf32>, vector<2x8x8xf32> -> vector<2x8x8xf32>
    "tpu.trace_stop"() : () -> ()
    %47 = arith.addf %46, %13 : vector<2x8x8xf32>
    %cst_24 = arith.constant dense<0xFF800000> : vector<2x8xf32>
    %48 = vector.multi_reduction <maximumf>, %47, %cst_24 [2] : vector<2x8x8xf32> to vector<2x8xf32>
    %49 = vector.shape_cast %48 : vector<2x8xf32> to vector<2x8x1xf32>
    %50 = vector.broadcast %49 : vector<2x8x1xf32> to vector<2x8x8xf32>
    %51 = arith.subf %47, %50 : vector<2x8x8xf32>
    %52 = math.exp %51 : vector<2x8x8xf32>
    %cst_25 = arith.constant dense<0.000000e+00> : vector<2x8xf32>
    %53 = vector.multi_reduction <add>, %52, %cst_25 [2] : vector<2x8x8xf32> to vector<2x8xf32>
    %54 = vector.shape_cast %53 : vector<2x8xf32> to vector<2x8x1xf32>
    %55 = tpu.reciprocal %54 {approx = true} : vector<2x8x1xf32> -> vector<2x8x1xf32>
    %56 = vector.broadcast %55 : vector<2x8x1xf32> to vector<2x8x8xf32>
    %57 = arith.mulf %52, %56 : vector<2x8x8xf32>
    "tpu.trace_start"() <{level = 10 : i32, message = "bqk,bkd->bqd"}> : () -> ()
    %cst_26 = arith.constant dense<0.000000e+00> : vector<2x8x16xf32>
    %58 = tpu.matmul %57, %45, %cst_26 {dimension_numbers = #tpu.dot_dimension_numbers<[2], [1], [1], [2], [0, 0, 0, 1, 1, 2], [0], [0]>} : vector<2x8x8xf32>, vector<2x8x16xf32>, vector<2x8x16xf32> -> vector<2x8x16xf32>
    "tpu.trace_stop"() : () -> ()
    %59 = vector.shape_cast %58 : vector<2x8x16xf32> to vector<16x16xf32>
    %60 = vector.extract_strided_slice %15 {offsets = [16, 0], sizes = [16, 32], strides = [1, 1]} : vector<32x32xf32> to vector<16x32xf32>
    %cst_27 = arith.constant dense<0.000000e+00> : vector<16x32xf32>
    %61 = tpu.matmul %59, %60, %cst_27 {dimension_numbers = #tpu.dot_dimension_numbers<[1], [0], [0], [1], [0, 0, 1, 1], [], []>} : vector<16x16xf32>, vector<16x32xf32>, vector<16x32xf32> -> vector<16x32xf32>
    %62 = arith.addf %40, %61 : vector<16x32xf32>
    %63 = arith.addf %62, %3 : vector<16x32xf32>
    %c0_28 = arith.constant 0 : index
    %c0_29 = arith.constant 0 : index
    %c0_30 = arith.constant 0 : index
    %64 = vector.load %arg10[%c0_28, %c0_29, %c0_30] : memref<1x1x32xf32, #tpu.memory_space<vmem>>, vector<1x1x32xf32>
    %65 = vector.shape_cast %64 : vector<1x1x32xf32> to vector<1x32xf32>
    %c0_31 = arith.constant 0 : index
    %c0_32 = arith.constant 0 : index
    %c0_33 = arith.constant 0 : index
    %66 = vector.load %arg11[%c0_31, %c0_32, %c0_33] : memref<1x1x32xf32, #tpu.memory_space<vmem>>, vector<1x1x32xf32>
    %67 = vector.shape_cast %66 : vector<1x1x32xf32> to vector<1x32xf32>
    %cst_34 = arith.constant dense<0.000000e+00> : vector<16xf32>
    %68 = vector.multi_reduction <add>, %63, %cst_34 [1] : vector<16x32xf32> to vector<16xf32>
    %69 = vector.shape_cast %68 : vector<16xf32> to vector<16x1xf32>
    %cst_35 = arith.constant 3.200000e+01 : f32
    %70 = vector.broadcast %cst_35 : f32 to vector<16x1xf32>
    %71 = arith.divf %69, %70 : vector<16x1xf32>
    %72 = vector.broadcast %71 : vector<16x1xf32> to vector<16x32xf32>
    %73 = arith.subf %63, %72 : vector<16x32xf32>
    %74 = vector.broadcast %71 : vector<16x1xf32> to vector<16x32xf32>
    %75 = arith.subf %63, %74 : vector<16x32xf32>
    %76 = arith.mulf %73, %75 : vector<16x32xf32>
    %cst_36 = arith.constant dense<0.000000e+00> : vector<16xf32>
    %77 = vector.multi_reduction <add>, %76, %cst_36 [1] : vector<16x32xf32> to vector<16xf32>
    %78 = vector.shape_cast %77 : vector<16xf32> to vector<16x1xf32>
    %cst_37 = arith.constant 3.200000e+01 : f32
    %79 = vector.broadcast %cst_37 : f32 to vector<16x1xf32>
    %80 = arith.divf %78, %79 : vector<16x1xf32>
    %81 = vector.broadcast %71 : vector<16x1xf32> to vector<16x32xf32>
    %82 = arith.subf %63, %81 : vector<16x32xf32>
    %cst_38 = arith.constant 9.99999996E-13 : f32
    %83 = vector.broadcast %cst_38 : f32 to vector<16x1xf32>
    %84 = arith.addf %80, %83 : vector<16x1xf32>
    %85 = math.rsqrt %84 : vector<16x1xf32>
    %86 = vector.broadcast %85 : vector<16x1xf32> to vector<16x32xf32>
    %87 = arith.mulf %82, %86 : vector<16x32xf32>
    %88 = vector.broadcast %65 : vector<1x32xf32> to vector<16x32xf32>
    %89 = arith.mulf %87, %88 : vector<16x32xf32>
    %90 = vector.broadcast %67 : vector<1x32xf32> to vector<16x32xf32>
    %91 = arith.addf %89, %90 : vector<16x32xf32>
    %c0_39 = arith.constant 0 : index
    %c0_40 = arith.constant 0 : index
    %c0_41 = arith.constant 0 : index
    %92 = vector.load %arg12[%c0_39, %c0_40, %c0_41] : memref<1x32x64xf32, #tpu.memory_space<vmem>>, vector<1x32x64xf32>
    %93 = vector.shape_cast %92 : vector<1x32x64xf32> to vector<32x64xf32>
    %cst_42 = arith.constant dense<0.000000e+00> : vector<16x64xf32>
    %94 = tpu.matmul %91, %93, %cst_42 {dimension_numbers = #tpu.dot_dimension_numbers<[1], [0], [0], [1], [0, 0, 1, 1], [], []>} : vector<16x32xf32>, vector<32x64xf32>, vector<16x64xf32> -> vector<16x64xf32>
    %c0_43 = arith.constant 0 : index
    %c0_44 = arith.constant 0 : index
    %c0_45 = arith.constant 0 : index
    %95 = vector.load %arg13[%c0_43, %c0_44, %c0_45] : memref<1x1x64xf32, #tpu.memory_space<vmem>>, vector<1x1x64xf32>
    %96 = vector.shape_cast %95 : vector<1x1x64xf32> to vector<1x64xf32>
    %97 = vector.broadcast %96 : vector<1x64xf32> to vector<16x64xf32>
    %98 = arith.addf %94, %97 : vector<16x64xf32>
    %cst_46 = arith.constant 5.000000e-01 : f32
    %99 = vector.broadcast %cst_46 : f32 to vector<16x64xf32>
    %100 = arith.mulf %99, %98 : vector<16x64xf32>
    %cst_47 = arith.constant 4.471500e-02 : f32
    %101 = vector.broadcast %cst_47 : f32 to vector<16x64xf32>
    %102 = arith.mulf %101, %98 : vector<16x64xf32>
    %103 = arith.mulf %102, %98 : vector<16x64xf32>
    %104 = arith.mulf %103, %98 : vector<16x64xf32>
    %105 = arith.addf %98, %104 : vector<16x64xf32>
    %cst_48 = arith.constant 0.797884583 : f32
    %106 = vector.broadcast %cst_48 : f32 to vector<16x64xf32>
    %107 = arith.mulf %106, %105 : vector<16x64xf32>
    %108 = math.tanh %107 : vector<16x64xf32>
    %cst_49 = arith.constant 1.000000e+00 : f32
    %109 = vector.broadcast %cst_49 : f32 to vector<16x64xf32>
    %110 = arith.addf %109, %108 : vector<16x64xf32>
    %111 = arith.mulf %100, %110 : vector<16x64xf32>
    %c0_50 = arith.constant 0 : index
    %c0_51 = arith.constant 0 : index
    %c0_52 = arith.constant 0 : index
    %112 = vector.load %arg14[%c0_50, %c0_51, %c0_52] : memref<1x64x32xf32, #tpu.memory_space<vmem>>, vector<1x64x32xf32>
    %113 = vector.shape_cast %112 : vector<1x64x32xf32> to vector<64x32xf32>
    %cst_53 = arith.constant dense<0.000000e+00> : vector<16x32xf32>
    %114 = tpu.matmul %111, %113, %cst_53 {dimension_numbers = #tpu.dot_dimension_numbers<[1], [0], [0], [1], [0, 0, 1, 1], [], []>} : vector<16x64xf32>, vector<64x32xf32>, vector<16x32xf32> -> vector<16x32xf32>
    %c0_54 = arith.constant 0 : index
    %c0_55 = arith.constant 0 : index
    %c0_56 = arith.constant 0 : index
    %115 = vector.load %arg15[%c0_54, %c0_55, %c0_56] : memref<1x1x32xf32, #tpu.memory_space<vmem>>, vector<1x1x32xf32>
    %116 = vector.shape_cast %115 : vector<1x1x32xf32> to vector<1x32xf32>
    %117 = vector.broadcast %116 : vector<1x32xf32> to vector<16x32xf32>
    %118 = arith.addf %114, %117 : vector<16x32xf32>
    %119 = arith.addf %118, %91 : vector<16x32xf32>
    %c0_57 = arith.constant 0 : index
    %c0_58 = arith.constant 0 : index
    %c0_59 = arith.constant 0 : index
    %120 = vector.load %arg16[%c0_57, %c0_58, %c0_59] : memref<1x1x32xf32, #tpu.memory_space<vmem>>, vector<1x1x32xf32>
    %121 = vector.shape_cast %120 : vector<1x1x32xf32> to vector<1x32xf32>
    %c0_60 = arith.constant 0 : index
    %c0_61 = arith.constant 0 : index
    %c0_62 = arith.constant 0 : index
    %122 = vector.load %arg17[%c0_60, %c0_61, %c0_62] : memref<1x1x32xf32, #tpu.memory_space<vmem>>, vector<1x1x32xf32>
    %123 = vector.shape_cast %122 : vector<1x1x32xf32> to vector<1x32xf32>
    %cst_63 = arith.constant dense<0.000000e+00> : vector<16xf32>
    %124 = vector.multi_reduction <add>, %119, %cst_63 [1] : vector<16x32xf32> to vector<16xf32>
    %125 = vector.shape_cast %124 : vector<16xf32> to vector<16x1xf32>
    %cst_64 = arith.constant 3.200000e+01 : f32
    %126 = vector.broadcast %cst_64 : f32 to vector<16x1xf32>
    %127 = arith.divf %125, %126 : vector<16x1xf32>
    %128 = vector.broadcast %127 : vector<16x1xf32> to vector<16x32xf32>
    %129 = arith.subf %119, %128 : vector<16x32xf32>
    %130 = vector.broadcast %127 : vector<16x1xf32> to vector<16x32xf32>
    %131 = arith.subf %119, %130 : vector<16x32xf32>
    %132 = arith.mulf %129, %131 : vector<16x32xf32>
    %cst_65 = arith.constant dense<0.000000e+00> : vector<16xf32>
    %133 = vector.multi_reduction <add>, %132, %cst_65 [1] : vector<16x32xf32> to vector<16xf32>
    %134 = vector.shape_cast %133 : vector<16xf32> to vector<16x1xf32>
    %cst_66 = arith.constant 3.200000e+01 : f32
    %135 = vector.broadcast %cst_66 : f32 to vector<16x1xf32>
    %136 = arith.divf %134, %135 : vector<16x1xf32>
    %137 = vector.broadcast %127 : vector<16x1xf32> to vector<16x32xf32>
    %138 = arith.subf %119, %137 : vector<16x32xf32>
    %cst_67 = arith.constant 9.99999996E-13 : f32
    %139 = vector.broadcast %cst_67 : f32 to vector<16x1xf32>
    %140 = arith.addf %136, %139 : vector<16x1xf32>
    %141 = math.rsqrt %140 : vector<16x1xf32>
    %142 = vector.broadcast %141 : vector<16x1xf32> to vector<16x32xf32>
    %143 = arith.mulf %138, %142 : vector<16x32xf32>
    %144 = vector.broadcast %121 : vector<1x32xf32> to vector<16x32xf32>
    %145 = arith.mulf %143, %144 : vector<16x32xf32>
    %146 = vector.broadcast %123 : vector<1x32xf32> to vector<16x32xf32>
    %147 = arith.addf %145, %146 : vector<16x32xf32>
    %c0_68 = arith.constant 0 : index
    %c0_69 = arith.constant 0 : index
    %148 = vector.load %arg18[%c0_68, %c0_69] : memref<16x32xf32, #tpu.memory_space<vmem>>, vector<16x32xf32>
    tpu.vector_store %arg18[%c0_68, %c0_69], %147 {strides = array<i32>} : memref<16x32xf32, #tpu.memory_space<vmem>>, vector<16x32xf32>,
    return
  }
  func.func @transform_0(%arg0: i32, %arg1: i32) -> (i32, i32) {
    %c0_i32 = arith.constant 0 : i32
    %c0_i32_0 = arith.constant 0 : i32
    return %arg0, %c0_i32 : i32, i32
  }
  func.func @transform_1(%arg0: i32, %arg1: i32) -> (i32, i32) {
    %c0_i32 = arith.constant 0 : i32
    %c0_i32_0 = arith.constant 0 : i32
    return %arg0, %c0_i32 : i32, i32
  }
  func.func @transform_2(%arg0: i32, %arg1: i32) -> (i32, i32) {
    %c0_i32 = arith.constant 0 : i32
    %c0_i32_0 = arith.constant 0 : i32
    %c0_i32_1 = arith.constant 0 : i32
    return %c0_i32, %c0_i32_0 : i32, i32
  }
  func.func @transform_3(%arg0: i32, %arg1: i32) -> (i32, i32) {
    %c0_i32 = arith.constant 0 : i32
    %c0_i32_0 = arith.constant 0 : i32
    %c0_i32_1 = arith.constant 0 : i32
    return %c0_i32, %c0_i32_0 : i32, i32
  }
  func.func @transform_4(%arg0: i32, %arg1: i32) -> (i32, i32, i32) {
    %c0_i32 = arith.constant 0 : i32
    %c0_i32_0 = arith.constant 0 : i32
    %c0_i32_1 = arith.constant 0 : i32
    return %arg1, %c0_i32, %c0_i32_0 : i32, i32, i32
  }
  func.func @transform_5(%arg0: i32, %arg1: i32) -> (i32, i32, i32) {
    %c0_i32 = arith.constant 0 : i32
    %c0_i32_0 = arith.constant 0 : i32
    %c0_i32_1 = arith.constant 0 : i32
    return %arg1, %c0_i32, %c0_i32_0 : i32, i32, i32
  }
  func.func @transform_6(%arg0: i32, %arg1: i32) -> (i32, i32, i32) {
    %c0_i32 = arith.constant 0 : i32
    %c0_i32_0 = arith.constant 0 : i32
    %c0_i32_1 = arith.constant 0 : i32
    return %arg1, %c0_i32, %c0_i32_0 : i32, i32, i32
  }
  func.func @transform_7(%arg0: i32, %arg1: i32) -> (i32, i32, i32) {
    %c0_i32 = arith.constant 0 : i32
    %c0_i32_0 = arith.constant 0 : i32
    %c0_i32_1 = arith.constant 0 : i32
    return %arg1, %c0_i32, %c0_i32_0 : i32, i32, i32
  }
  func.func @transform_8(%arg0: i32, %arg1: i32) -> (i32, i32, i32) {
    %c0_i32 = arith.constant 0 : i32
    %c0_i32_0 = arith.constant 0 : i32
    %c0_i32_1 = arith.constant 0 : i32
    return %arg1, %c0_i32, %c0_i32_0 : i32, i32, i32
  }
  func.func @transform_9(%arg0: i32, %arg1: i32) -> (i32, i32, i32) {
    %c0_i32 = arith.constant 0 : i32
    %c0_i32_0 = arith.constant 0 : i32
    %c0_i32_1 = arith.constant 0 : i32
    return %arg1, %c0_i32, %c0_i32_0 : i32, i32, i32
  }
  func.func @transform_10(%arg0: i32, %arg1: i32) -> (i32, i32, i32) {
    %c0_i32 = arith.constant 0 : i32
    %c0_i32_0 = arith.constant 0 : i32
    %c0_i32_1 = arith.constant 0 : i32
    return %arg1, %c0_i32, %c0_i32_0 : i32, i32, i32
  }
  func.func @transform_11(%arg0: i32, %arg1: i32) -> (i32, i32, i32) {
    %c0_i32 = arith.constant 0 : i32
    %c0_i32_0 = arith.constant 0 : i32
    %c0_i32_1 = arith.constant 0 : i32
    return %arg1, %c0_i32, %c0_i32_0 : i32, i32, i32
  }
  func.func @transform_12(%arg0: i32, %arg1: i32) -> (i32, i32, i32) {
    %c0_i32 = arith.constant 0 : i32
    %c0_i32_0 = arith.constant 0 : i32
    %c0_i32_1 = arith.constant 0 : i32
    return %arg1, %c0_i32, %c0_i32_0 : i32, i32, i32
  }
  func.func @transform_13(%arg0: i32, %arg1: i32) -> (i32, i32, i32) {
    %c0_i32 = arith.constant 0 : i32
    %c0_i32_0 = arith.constant 0 : i32
    %c0_i32_1 = arith.constant 0 : i32
    return %arg1, %c0_i32, %c0_i32_0 : i32, i32, i32
  }
  func.func @transform_14(%arg0: i32, %arg1: i32) -> (i32, i32, i32) {
    %c0_i32 = arith.constant 0 : i32
    %c0_i32_0 = arith.constant 0 : i32
    %c0_i32_1 = arith.constant 0 : i32
    return %arg1, %c0_i32, %c0_i32_0 : i32, i32, i32
  }
  func.func @transform_15(%arg0: i32, %arg1: i32) -> (i32, i32, i32) {
    %c0_i32 = arith.constant 0 : i32
    %c0_i32_0 = arith.constant 0 : i32
    %c0_i32_1 = arith.constant 0 : i32
    return %arg1, %c0_i32, %c0_i32_0 : i32, i32, i32
  }
  func.func @transform_16(%arg0: i32, %arg1: i32) -> (i32, i32) {
    %c0_i32 = arith.constant 0 : i32
    %c0_i32_0 = arith.constant 0 : i32
    return %arg0, %c0_i32 : i32, i32
  }
}

module attributes {stable_mosaic.version = 11 : i64} {
  func.func @_encoder_kernel(%arg0: i32, %arg1: i32, %arg2: memref<8x32xf32, #tpu.memory_space<vmem>>, %arg3: memref<8x8xf32, #tpu.memory_space<vmem>>, %arg4: memref<1x32xf32, #tpu.memory_space<vmem>>, %arg5: memref<1x32xf32, #tpu.memory_space<vmem>>, %arg6: memref<1x32x96xf32, #tpu.memory_space<vmem>>, %arg7: memref<1x1x96xf32, #tpu.memory_space<vmem>>, %arg8: memref<1x32x32xf32, #tpu.memory_space<vmem>>, %arg9: memref<1x1x32xf32, #tpu.memory_space<vmem>>, %arg10: memref<1x1x32xf32, #tpu.memory_space<vmem>>, %arg11: memref<1x1x32xf32, #tpu.memory_space<vmem>>, %arg12: memref<1x32x64xf32, #tpu.memory_space<vmem>>, %arg13: memref<1x1x64xf32, #tpu.memory_space<vmem>>, %arg14: memref<1x64x32xf32, #tpu.memory_space<vmem>>, %arg15: memref<1x1x32xf32, #tpu.memory_space<vmem>>, %arg16: memref<1x1x32xf32, #tpu.memory_space<vmem>>, %arg17: memref<1x1x32xf32, #tpu.memory_space<vmem>>, %arg18: memref<8x32xf32, #tpu.memory_space<vmem>>) attributes {dimension_semantics = [#tpu.dimension_semantics<parallel>, #tpu.dimension_semantics<arbitrary>], iteration_bounds = array<i64: 2, 2>, scalar_prefetch = 0 : i64, scratch_operands = 0 : i64, tpu.core_type = #tpu.core_type<tc>, window_params = [{transform_indices = @transform_0, window_bounds = array<i64: 8, 32>}, {transform_indices = @transform_1, window_bounds = array<i64: 8, 8>}, {pipeline_mode = #tpu.pipeline_mode<synchronous>, transform_indices = @transform_2, window_bounds = array<i64: 1, 32>}, {pipeline_mode = #tpu.pipeline_mode<synchronous>, transform_indices = @transform_3, window_bounds = array<i64: 1, 32>}, {transform_indices = @transform_4, window_bounds = array<i64: 1, 32, 96>}, {transform_indices = @transform_5, window_bounds = array<i64: 1, 1, 96>}, {transform_indices = @transform_6, window_bounds = array<i64: 1, 32, 32>}, {transform_indices = @transform_7, window_bounds = array<i64: 1, 1, 32>}, {transform_indices = @transform_8, window_bounds = array<i64: 1, 1, 32>}, {transform_indices = @transform_9, window_bounds = array<i64: 1, 1, 32>}, {transform_indices = @transform_10, window_bounds = array<i64: 1, 32, 64>}, {transform_indices = @transform_11, window_bounds = array<i64: 1, 1, 64>}, {transform_indices = @transform_12, window_bounds = array<i64: 1, 64, 32>}, {transform_indices = @transform_13, window_bounds = array<i64: 1, 1, 32>}, {transform_indices = @transform_14, window_bounds = array<i64: 1, 1, 32>}, {transform_indices = @transform_15, window_bounds = array<i64: 1, 1, 32>}, {transform_indices = @transform_16, window_bounds = array<i64: 8, 32>}]} {
    %c0_i32 = arith.constant 0 : i32
    %0 = arith.cmpi eq, %arg1, %c0_i32 : i32
    %1 = arith.extui %0 : i1 to i32
    %c0_i32_0 = arith.constant 0 : i32
    %2 = arith.cmpi ne, %1, %c0_i32_0 : i32
    scf.if %2 {
      %c0_70 = arith.constant 0 : index
      %c0_71 = arith.constant 0 : index
      %149 = vector.load %arg2[%c0_70, %c0_71] : memref<8x32xf32, #tpu.memory_space<vmem>>, vector<8x32xf32>
      %c0_72 = arith.constant 0 : index
      %c0_73 = arith.constant 0 : index
      %150 = vector.load %arg4[%c0_72, %c0_73] : memref<1x32xf32, #tpu.memory_space<vmem>>, vector<1x32xf32>
      %c0_74 = arith.constant 0 : index
      %c0_75 = arith.constant 0 : index
      %151 = vector.load %arg5[%c0_74, %c0_75] : memref<1x32xf32, #tpu.memory_space<vmem>>, vector<1x32xf32>
      %cst_76 = arith.constant dense<0.000000e+00> : vector<8xf32>
      %152 = vector.multi_reduction <add>, %149, %cst_76 [1] : vector<8x32xf32> to vector<8xf32>
      %153 = vector.shape_cast %152 : vector<8xf32> to vector<8x1xf32>
      %cst_77 = arith.constant 3.200000e+01 : f32
      %154 = vector.broadcast %cst_77 : f32 to vector<8x1xf32>
      %155 = arith.divf %153, %154 : vector<8x1xf32>
      %156 = vector.broadcast %155 : vector<8x1xf32> to vector<8x32xf32>
      %157 = arith.subf %149, %156 : vector<8x32xf32>
      %158 = vector.broadcast %155 : vector<8x1xf32> to vector<8x32xf32>
      %159 = arith.subf %149, %158 : vector<8x32xf32>
      %160 = arith.mulf %157, %159 : vector<8x32xf32>
      %cst_78 = arith.constant dense<0.000000e+00> : vector<8xf32>
      %161 = vector.multi_reduction <add>, %160, %cst_78 [1] : vector<8x32xf32> to vector<8xf32>
      %162 = vector.shape_cast %161 : vector<8xf32> to vector<8x1xf32>
      %cst_79 = arith.constant 3.200000e+01 : f32
      %163 = vector.broadcast %cst_79 : f32 to vector<8x1xf32>
      %164 = arith.divf %162, %163 : vector<8x1xf32>
      %165 = vector.broadcast %155 : vector<8x1xf32> to vector<8x32xf32>
      %166 = arith.subf %149, %165 : vector<8x32xf32>
      %cst_80 = arith.constant 9.99999996E-13 : f32
      %167 = vector.broadcast %cst_80 : f32 to vector<8x1xf32>
      %168 = arith.addf %164, %167 : vector<8x1xf32>
      %169 = math.rsqrt %168 : vector<8x1xf32>
      %170 = vector.broadcast %169 : vector<8x1xf32> to vector<8x32xf32>
      %171 = arith.mulf %166, %170 : vector<8x32xf32>
      %172 = vector.broadcast %150 : vector<1x32xf32> to vector<8x32xf32>
      %173 = arith.mulf %171, %172 : vector<8x32xf32>
      %174 = vector.broadcast %151 : vector<1x32xf32> to vector<8x32xf32>
      %175 = arith.addf %173, %174 : vector<8x32xf32>
      %c0_81 = arith.constant 0 : index
      %c0_82 = arith.constant 0 : index
      %176 = vector.load %arg18[%c0_81, %c0_82] : memref<8x32xf32, #tpu.memory_space<vmem>>, vector<8x32xf32>
      tpu.vector_store %arg18[%c0_81, %c0_82], %175 {strides = array<i32>} : memref<8x32xf32, #tpu.memory_space<vmem>>, vector<8x32xf32>,
    } else {
    }
    %c0 = arith.constant 0 : index
    %c0_1 = arith.constant 0 : index
    %3 = vector.load %arg18[%c0, %c0_1] : memref<8x32xf32, #tpu.memory_space<vmem>>, vector<8x32xf32>
    %c0_2 = arith.constant 0 : index
    %c0_3 = arith.constant 0 : index
    %c0_4 = arith.constant 0 : index
    %4 = vector.load %arg6[%c0_2, %c0_3, %c0_4] : memref<1x32x96xf32, #tpu.memory_space<vmem>>, vector<1x32x96xf32>
    %5 = vector.shape_cast %4 : vector<1x32x96xf32> to vector<32x96xf32>
    %cst = arith.constant dense<0.000000e+00> : vector<8x96xf32>
    %6 = tpu.matmul %3, %5, %cst {dimension_numbers = #tpu.dot_dimension_numbers<[1], [0], [0], [1], [0, 0, 1, 1], [], []>} : vector<8x32xf32>, vector<32x96xf32>, vector<8x96xf32> -> vector<8x96xf32>
    %c0_5 = arith.constant 0 : index
    %c0_6 = arith.constant 0 : index
    %c0_7 = arith.constant 0 : index
    %7 = vector.load %arg7[%c0_5, %c0_6, %c0_7] : memref<1x1x96xf32, #tpu.memory_space<vmem>>, vector<1x1x96xf32>
    %8 = vector.shape_cast %7 : vector<1x1x96xf32> to vector<1x96xf32>
    %9 = vector.broadcast %8 : vector<1x96xf32> to vector<8x96xf32>
    %10 = arith.addf %6, %9 : vector<8x96xf32>
    %11 = vector.shape_cast %10 : vector<8x96xf32> to vector<1x8x96xf32>
    %c0_8 = arith.constant 0 : index
    %c0_9 = arith.constant 0 : index
    %12 = vector.load %arg3[%c0_8, %c0_9] : memref<8x8xf32, #tpu.memory_space<vmem>>, vector<8x8xf32>
    %13 = vector.shape_cast %12 : vector<8x8xf32> to vector<1x8x8xf32>
    %c0_10 = arith.constant 0 : index
    %c0_11 = arith.constant 0 : index
    %c0_12 = arith.constant 0 : index
    %14 = vector.load %arg8[%c0_10, %c0_11, %c0_12] : memref<1x32x32xf32, #tpu.memory_space<vmem>>, vector<1x32x32xf32>
    %15 = vector.shape_cast %14 : vector<1x32x32xf32> to vector<32x32xf32>
    %c0_13 = arith.constant 0 : index
    %c0_14 = arith.constant 0 : index
    %c0_15 = arith.constant 0 : index
    %16 = vector.load %arg9[%c0_13, %c0_14, %c0_15] : memref<1x1x32xf32, #tpu.memory_space<vmem>>, vector<1x1x32xf32>
    %17 = vector.shape_cast %16 : vector<1x1x32xf32> to vector<1x32xf32>
    %18 = vector.extract_strided_slice %11 {offsets = [0, 0, 0], sizes = [1, 8, 16], strides = [1, 1, 1]} : vector<1x8x96xf32> to vector<1x8x16xf32>
    %cst_16 = arith.constant 2.500000e-01 : f32
    %19 = vector.broadcast %cst_16 : f32 to vector<1x8x16xf32>
    %20 = arith.mulf %18, %19 : vector<1x8x16xf32>
    %21 = vector.extract_strided_slice %11 {offsets = [0, 0, 32], sizes = [1, 8, 16], strides = [1, 1, 1]} : vector<1x8x96xf32> to vector<1x8x16xf32>
    %22 = vector.extract_strided_slice %11 {offsets = [0, 0, 64], sizes = [1, 8, 16], strides = [1, 1, 1]} : vector<1x8x96xf32> to vector<1x8x16xf32>
    "tpu.trace_start"() <{level = 10 : i32, message = "bqd,bkd->bqk"}> : () -> ()
    %cst_17 = arith.constant dense<0.000000e+00> : vector<1x8x8xf32>
    %23 = tpu.matmul %20, %21, %cst_17 {dimension_numbers = #tpu.dot_dimension_numbers<[2], [2], [1], [1], [0, 0, 0, 1, 1, 1], [0], [0]>} : vector<1x8x16xf32>, vector<1x8x16xf32>, vector<1x8x8xf32> -> vector<1x8x8xf32>
    "tpu.trace_stop"() : () -> ()
    %24 = arith.addf %23, %13 : vector<1x8x8xf32>
    %cst_18 = arith.constant dense<0xFF800000> : vector<1x8xf32>
    %25 = vector.multi_reduction <maximumf>, %24, %cst_18 [2] : vector<1x8x8xf32> to vector<1x8xf32>
    %26 = vector.shape_cast %25 : vector<1x8xf32> to vector<1x8x1xf32>
    %27 = vector.broadcast %26 : vector<1x8x1xf32> to vector<1x8x8xf32>
    %28 = arith.subf %24, %27 : vector<1x8x8xf32>
    %29 = math.exp %28 : vector<1x8x8xf32>
    %cst_19 = arith.constant dense<0.000000e+00> : vector<1x8xf32>
    %30 = vector.multi_reduction <add>, %29, %cst_19 [2] : vector<1x8x8xf32> to vector<1x8xf32>
    %31 = vector.shape_cast %30 : vector<1x8xf32> to vector<1x8x1xf32>
    %32 = tpu.reciprocal %31 {approx = true} : vector<1x8x1xf32> -> vector<1x8x1xf32>
    %33 = vector.broadcast %32 : vector<1x8x1xf32> to vector<1x8x8xf32>
    %34 = arith.mulf %29, %33 : vector<1x8x8xf32>
    "tpu.trace_start"() <{level = 10 : i32, message = "bqk,bkd->bqd"}> : () -> ()
    %cst_20 = arith.constant dense<0.000000e+00> : vector<1x8x16xf32>
    %35 = tpu.matmul %34, %22, %cst_20 {dimension_numbers = #tpu.dot_dimension_numbers<[2], [1], [1], [2], [0, 0, 0, 1, 1, 2], [0], [0]>} : vector<1x8x8xf32>, vector<1x8x16xf32>, vector<1x8x16xf32> -> vector<1x8x16xf32>
    "tpu.trace_stop"() : () -> ()
    %36 = vector.shape_cast %35 : vector<1x8x16xf32> to vector<8x16xf32>
    %37 = vector.extract_strided_slice %15 {offsets = [0, 0], sizes = [16, 32], strides = [1, 1]} : vector<32x32xf32> to vector<16x32xf32>
    %cst_21 = arith.constant dense<0.000000e+00> : vector<8x32xf32>
    %38 = tpu.matmul %36, %37, %cst_21 {dimension_numbers = #tpu.dot_dimension_numbers<[1], [0], [0], [1], [0, 0, 1, 1], [], []>} : vector<8x16xf32>, vector<16x32xf32>, vector<8x32xf32> -> vector<8x32xf32>
    %39 = vector.broadcast %17 : vector<1x32xf32> to vector<8x32xf32>
    %40 = arith.addf %39, %38 : vector<8x32xf32>
    %41 = vector.extract_strided_slice %11 {offsets = [0, 0, 16], sizes = [1, 8, 16], strides = [1, 1, 1]} : vector<1x8x96xf32> to vector<1x8x16xf32>
    %cst_22 = arith.constant 2.500000e-01 : f32
    %42 = vector.broadcast %cst_22 : f32 to vector<1x8x16xf32>
    %43 = arith.mulf %41, %42 : vector<1x8x16xf32>
    %44 = vector.extract_strided_slice %11 {offsets = [0, 0, 48], sizes = [1, 8, 16], strides = [1, 1, 1]} : vector<1x8x96xf32> to vector<1x8x16xf32>
    %45 = vector.extract_strided_slice %11 {offsets = [0, 0, 80], sizes = [1, 8, 16], strides = [1, 1, 1]} : vector<1x8x96xf32> to vector<1x8x16xf32>
    "tpu.trace_start"() <{level = 10 : i32, message = "bqd,bkd->bqk"}> : () -> ()
    %cst_23 = arith.constant dense<0.000000e+00> : vector<1x8x8xf32>
    %46 = tpu.matmul %43, %44, %cst_23 {dimension_numbers = #tpu.dot_dimension_numbers<[2], [2], [1], [1], [0, 0, 0, 1, 1, 1], [0], [0]>} : vector<1x8x16xf32>, vector<1x8x16xf32>, vector<1x8x8xf32> -> vector<1x8x8xf32>
    "tpu.trace_stop"() : () -> ()
    %47 = arith.addf %46, %13 : vector<1x8x8xf32>
    %cst_24 = arith.constant dense<0xFF800000> : vector<1x8xf32>
    %48 = vector.multi_reduction <maximumf>, %47, %cst_24 [2] : vector<1x8x8xf32> to vector<1x8xf32>
    %49 = vector.shape_cast %48 : vector<1x8xf32> to vector<1x8x1xf32>
    %50 = vector.broadcast %49 : vector<1x8x1xf32> to vector<1x8x8xf32>
    %51 = arith.subf %47, %50 : vector<1x8x8xf32>
    %52 = math.exp %51 : vector<1x8x8xf32>
    %cst_25 = arith.constant dense<0.000000e+00> : vector<1x8xf32>
    %53 = vector.multi_reduction <add>, %52, %cst_25 [2] : vector<1x8x8xf32> to vector<1x8xf32>
    %54 = vector.shape_cast %53 : vector<1x8xf32> to vector<1x8x1xf32>
    %55 = tpu.reciprocal %54 {approx = true} : vector<1x8x1xf32> -> vector<1x8x1xf32>
    %56 = vector.broadcast %55 : vector<1x8x1xf32> to vector<1x8x8xf32>
    %57 = arith.mulf %52, %56 : vector<1x8x8xf32>
    "tpu.trace_start"() <{level = 10 : i32, message = "bqk,bkd->bqd"}> : () -> ()
    %cst_26 = arith.constant dense<0.000000e+00> : vector<1x8x16xf32>
    %58 = tpu.matmul %57, %45, %cst_26 {dimension_numbers = #tpu.dot_dimension_numbers<[2], [1], [1], [2], [0, 0, 0, 1, 1, 2], [0], [0]>} : vector<1x8x8xf32>, vector<1x8x16xf32>, vector<1x8x16xf32> -> vector<1x8x16xf32>
    "tpu.trace_stop"() : () -> ()
    %59 = vector.shape_cast %58 : vector<1x8x16xf32> to vector<8x16xf32>
    %60 = vector.extract_strided_slice %15 {offsets = [16, 0], sizes = [16, 32], strides = [1, 1]} : vector<32x32xf32> to vector<16x32xf32>
    %cst_27 = arith.constant dense<0.000000e+00> : vector<8x32xf32>
    %61 = tpu.matmul %59, %60, %cst_27 {dimension_numbers = #tpu.dot_dimension_numbers<[1], [0], [0], [1], [0, 0, 1, 1], [], []>} : vector<8x16xf32>, vector<16x32xf32>, vector<8x32xf32> -> vector<8x32xf32>
    %62 = arith.addf %40, %61 : vector<8x32xf32>
    %63 = arith.addf %62, %3 : vector<8x32xf32>
    %c0_28 = arith.constant 0 : index
    %c0_29 = arith.constant 0 : index
    %c0_30 = arith.constant 0 : index
    %64 = vector.load %arg10[%c0_28, %c0_29, %c0_30] : memref<1x1x32xf32, #tpu.memory_space<vmem>>, vector<1x1x32xf32>
    %65 = vector.shape_cast %64 : vector<1x1x32xf32> to vector<1x32xf32>
    %c0_31 = arith.constant 0 : index
    %c0_32 = arith.constant 0 : index
    %c0_33 = arith.constant 0 : index
    %66 = vector.load %arg11[%c0_31, %c0_32, %c0_33] : memref<1x1x32xf32, #tpu.memory_space<vmem>>, vector<1x1x32xf32>
    %67 = vector.shape_cast %66 : vector<1x1x32xf32> to vector<1x32xf32>
    %cst_34 = arith.constant dense<0.000000e+00> : vector<8xf32>
    %68 = vector.multi_reduction <add>, %63, %cst_34 [1] : vector<8x32xf32> to vector<8xf32>
    %69 = vector.shape_cast %68 : vector<8xf32> to vector<8x1xf32>
    %cst_35 = arith.constant 3.200000e+01 : f32
    %70 = vector.broadcast %cst_35 : f32 to vector<8x1xf32>
    %71 = arith.divf %69, %70 : vector<8x1xf32>
    %72 = vector.broadcast %71 : vector<8x1xf32> to vector<8x32xf32>
    %73 = arith.subf %63, %72 : vector<8x32xf32>
    %74 = vector.broadcast %71 : vector<8x1xf32> to vector<8x32xf32>
    %75 = arith.subf %63, %74 : vector<8x32xf32>
    %76 = arith.mulf %73, %75 : vector<8x32xf32>
    %cst_36 = arith.constant dense<0.000000e+00> : vector<8xf32>
    %77 = vector.multi_reduction <add>, %76, %cst_36 [1] : vector<8x32xf32> to vector<8xf32>
    %78 = vector.shape_cast %77 : vector<8xf32> to vector<8x1xf32>
    %cst_37 = arith.constant 3.200000e+01 : f32
    %79 = vector.broadcast %cst_37 : f32 to vector<8x1xf32>
    %80 = arith.divf %78, %79 : vector<8x1xf32>
    %81 = vector.broadcast %71 : vector<8x1xf32> to vector<8x32xf32>
    %82 = arith.subf %63, %81 : vector<8x32xf32>
    %cst_38 = arith.constant 9.99999996E-13 : f32
    %83 = vector.broadcast %cst_38 : f32 to vector<8x1xf32>
    %84 = arith.addf %80, %83 : vector<8x1xf32>
    %85 = math.rsqrt %84 : vector<8x1xf32>
    %86 = vector.broadcast %85 : vector<8x1xf32> to vector<8x32xf32>
    %87 = arith.mulf %82, %86 : vector<8x32xf32>
    %88 = vector.broadcast %65 : vector<1x32xf32> to vector<8x32xf32>
    %89 = arith.mulf %87, %88 : vector<8x32xf32>
    %90 = vector.broadcast %67 : vector<1x32xf32> to vector<8x32xf32>
    %91 = arith.addf %89, %90 : vector<8x32xf32>
    %c0_39 = arith.constant 0 : index
    %c0_40 = arith.constant 0 : index
    %c0_41 = arith.constant 0 : index
    %92 = vector.load %arg12[%c0_39, %c0_40, %c0_41] : memref<1x32x64xf32, #tpu.memory_space<vmem>>, vector<1x32x64xf32>
    %93 = vector.shape_cast %92 : vector<1x32x64xf32> to vector<32x64xf32>
    %cst_42 = arith.constant dense<0.000000e+00> : vector<8x64xf32>
    %94 = tpu.matmul %91, %93, %cst_42 {dimension_numbers = #tpu.dot_dimension_numbers<[1], [0], [0], [1], [0, 0, 1, 1], [], []>} : vector<8x32xf32>, vector<32x64xf32>, vector<8x64xf32> -> vector<8x64xf32>
    %c0_43 = arith.constant 0 : index
    %c0_44 = arith.constant 0 : index
    %c0_45 = arith.constant 0 : index
    %95 = vector.load %arg13[%c0_43, %c0_44, %c0_45] : memref<1x1x64xf32, #tpu.memory_space<vmem>>, vector<1x1x64xf32>
    %96 = vector.shape_cast %95 : vector<1x1x64xf32> to vector<1x64xf32>
    %97 = vector.broadcast %96 : vector<1x64xf32> to vector<8x64xf32>
    %98 = arith.addf %94, %97 : vector<8x64xf32>
    %cst_46 = arith.constant 5.000000e-01 : f32
    %99 = vector.broadcast %cst_46 : f32 to vector<8x64xf32>
    %100 = arith.mulf %99, %98 : vector<8x64xf32>
    %cst_47 = arith.constant 4.471500e-02 : f32
    %101 = vector.broadcast %cst_47 : f32 to vector<8x64xf32>
    %102 = arith.mulf %101, %98 : vector<8x64xf32>
    %103 = arith.mulf %102, %98 : vector<8x64xf32>
    %104 = arith.mulf %103, %98 : vector<8x64xf32>
    %105 = arith.addf %98, %104 : vector<8x64xf32>
    %cst_48 = arith.constant 0.797884583 : f32
    %106 = vector.broadcast %cst_48 : f32 to vector<8x64xf32>
    %107 = arith.mulf %106, %105 : vector<8x64xf32>
    %108 = math.tanh %107 : vector<8x64xf32>
    %cst_49 = arith.constant 1.000000e+00 : f32
    %109 = vector.broadcast %cst_49 : f32 to vector<8x64xf32>
    %110 = arith.addf %109, %108 : vector<8x64xf32>
    %111 = arith.mulf %100, %110 : vector<8x64xf32>
    %c0_50 = arith.constant 0 : index
    %c0_51 = arith.constant 0 : index
    %c0_52 = arith.constant 0 : index
    %112 = vector.load %arg14[%c0_50, %c0_51, %c0_52] : memref<1x64x32xf32, #tpu.memory_space<vmem>>, vector<1x64x32xf32>
    %113 = vector.shape_cast %112 : vector<1x64x32xf32> to vector<64x32xf32>
    %cst_53 = arith.constant dense<0.000000e+00> : vector<8x32xf32>
    %114 = tpu.matmul %111, %113, %cst_53 {dimension_numbers = #tpu.dot_dimension_numbers<[1], [0], [0], [1], [0, 0, 1, 1], [], []>} : vector<8x64xf32>, vector<64x32xf32>, vector<8x32xf32> -> vector<8x32xf32>
    %c0_54 = arith.constant 0 : index
    %c0_55 = arith.constant 0 : index
    %c0_56 = arith.constant 0 : index
    %115 = vector.load %arg15[%c0_54, %c0_55, %c0_56] : memref<1x1x32xf32, #tpu.memory_space<vmem>>, vector<1x1x32xf32>
    %116 = vector.shape_cast %115 : vector<1x1x32xf32> to vector<1x32xf32>
    %117 = vector.broadcast %116 : vector<1x32xf32> to vector<8x32xf32>
    %118 = arith.addf %114, %117 : vector<8x32xf32>
    %119 = arith.addf %118, %91 : vector<8x32xf32>
    %c0_57 = arith.constant 0 : index
    %c0_58 = arith.constant 0 : index
    %c0_59 = arith.constant 0 : index
    %120 = vector.load %arg16[%c0_57, %c0_58, %c0_59] : memref<1x1x32xf32, #tpu.memory_space<vmem>>, vector<1x1x32xf32>
    %121 = vector.shape_cast %120 : vector<1x1x32xf32> to vector<1x32xf32>
    %c0_60 = arith.constant 0 : index
    %c0_61 = arith.constant 0 : index
    %c0_62 = arith.constant 0 : index
    %122 = vector.load %arg17[%c0_60, %c0_61, %c0_62] : memref<1x1x32xf32, #tpu.memory_space<vmem>>, vector<1x1x32xf32>
    %123 = vector.shape_cast %122 : vector<1x1x32xf32> to vector<1x32xf32>
    %cst_63 = arith.constant dense<0.000000e+00> : vector<8xf32>
    %124 = vector.multi_reduction <add>, %119, %cst_63 [1] : vector<8x32xf32> to vector<8xf32>
    %125 = vector.shape_cast %124 : vector<8xf32> to vector<8x1xf32>
    %cst_64 = arith.constant 3.200000e+01 : f32
    %126 = vector.broadcast %cst_64 : f32 to vector<8x1xf32>
    %127 = arith.divf %125, %126 : vector<8x1xf32>
    %128 = vector.broadcast %127 : vector<8x1xf32> to vector<8x32xf32>
    %129 = arith.subf %119, %128 : vector<8x32xf32>
    %130 = vector.broadcast %127 : vector<8x1xf32> to vector<8x32xf32>
    %131 = arith.subf %119, %130 : vector<8x32xf32>
    %132 = arith.mulf %129, %131 : vector<8x32xf32>
    %cst_65 = arith.constant dense<0.000000e+00> : vector<8xf32>
    %133 = vector.multi_reduction <add>, %132, %cst_65 [1] : vector<8x32xf32> to vector<8xf32>
    %134 = vector.shape_cast %133 : vector<8xf32> to vector<8x1xf32>
    %cst_66 = arith.constant 3.200000e+01 : f32
    %135 = vector.broadcast %cst_66 : f32 to vector<8x1xf32>
    %136 = arith.divf %134, %135 : vector<8x1xf32>
    %137 = vector.broadcast %127 : vector<8x1xf32> to vector<8x32xf32>
    %138 = arith.subf %119, %137 : vector<8x32xf32>
    %cst_67 = arith.constant 9.99999996E-13 : f32
    %139 = vector.broadcast %cst_67 : f32 to vector<8x1xf32>
    %140 = arith.addf %136, %139 : vector<8x1xf32>
    %141 = math.rsqrt %140 : vector<8x1xf32>
    %142 = vector.broadcast %141 : vector<8x1xf32> to vector<8x32xf32>
    %143 = arith.mulf %138, %142 : vector<8x32xf32>
    %144 = vector.broadcast %121 : vector<1x32xf32> to vector<8x32xf32>
    %145 = arith.mulf %143, %144 : vector<8x32xf32>
    %146 = vector.broadcast %123 : vector<1x32xf32> to vector<8x32xf32>
    %147 = arith.addf %145, %146 : vector<8x32xf32>
    %c0_68 = arith.constant 0 : index
    %c0_69 = arith.constant 0 : index
    %148 = vector.load %arg18[%c0_68, %c0_69] : memref<8x32xf32, #tpu.memory_space<vmem>>, vector<8x32xf32>
    tpu.vector_store %arg18[%c0_68, %c0_69], %147 {strides = array<i32>} : memref<8x32xf32, #tpu.memory_space<vmem>>, vector<8x32xf32>,
    return
  }
  func.func @transform_0(%arg0: i32, %arg1: i32) -> (i32, i32) {
    %c0_i32 = arith.constant 0 : i32
    %c0_i32_0 = arith.constant 0 : i32
    return %arg0, %c0_i32 : i32, i32
  }
  func.func @transform_1(%arg0: i32, %arg1: i32) -> (i32, i32) {
    %c0_i32 = arith.constant 0 : i32
    %c0_i32_0 = arith.constant 0 : i32
    return %arg0, %c0_i32 : i32, i32
  }
  func.func @transform_2(%arg0: i32, %arg1: i32) -> (i32, i32) {
    %c0_i32 = arith.constant 0 : i32
    %c0_i32_0 = arith.constant 0 : i32
    %c0_i32_1 = arith.constant 0 : i32
    return %c0_i32, %c0_i32_0 : i32, i32
  }
  func.func @transform_3(%arg0: i32, %arg1: i32) -> (i32, i32) {
    %c0_i32 = arith.constant 0 : i32
    %c0_i32_0 = arith.constant 0 : i32
    %c0_i32_1 = arith.constant 0 : i32
    return %c0_i32, %c0_i32_0 : i32, i32
  }
  func.func @transform_4(%arg0: i32, %arg1: i32) -> (i32, i32, i32) {
    %c0_i32 = arith.constant 0 : i32
    %c0_i32_0 = arith.constant 0 : i32
    %c0_i32_1 = arith.constant 0 : i32
    return %arg1, %c0_i32, %c0_i32_0 : i32, i32, i32
  }
  func.func @transform_5(%arg0: i32, %arg1: i32) -> (i32, i32, i32) {
    %c0_i32 = arith.constant 0 : i32
    %c0_i32_0 = arith.constant 0 : i32
    %c0_i32_1 = arith.constant 0 : i32
    return %arg1, %c0_i32, %c0_i32_0 : i32, i32, i32
  }
  func.func @transform_6(%arg0: i32, %arg1: i32) -> (i32, i32, i32) {
    %c0_i32 = arith.constant 0 : i32
    %c0_i32_0 = arith.constant 0 : i32
    %c0_i32_1 = arith.constant 0 : i32
    return %arg1, %c0_i32, %c0_i32_0 : i32, i32, i32
  }
  func.func @transform_7(%arg0: i32, %arg1: i32) -> (i32, i32, i32) {
    %c0_i32 = arith.constant 0 : i32
    %c0_i32_0 = arith.constant 0 : i32
    %c0_i32_1 = arith.constant 0 : i32
    return %arg1, %c0_i32, %c0_i32_0 : i32, i32, i32
  }
  func.func @transform_8(%arg0: i32, %arg1: i32) -> (i32, i32, i32) {
    %c0_i32 = arith.constant 0 : i32
    %c0_i32_0 = arith.constant 0 : i32
    %c0_i32_1 = arith.constant 0 : i32
    return %arg1, %c0_i32, %c0_i32_0 : i32, i32, i32
  }
  func.func @transform_9(%arg0: i32, %arg1: i32) -> (i32, i32, i32) {
    %c0_i32 = arith.constant 0 : i32
    %c0_i32_0 = arith.constant 0 : i32
    %c0_i32_1 = arith.constant 0 : i32
    return %arg1, %c0_i32, %c0_i32_0 : i32, i32, i32
  }
  func.func @transform_10(%arg0: i32, %arg1: i32) -> (i32, i32, i32) {
    %c0_i32 = arith.constant 0 : i32
    %c0_i32_0 = arith.constant 0 : i32
    %c0_i32_1 = arith.constant 0 : i32
    return %arg1, %c0_i32, %c0_i32_0 : i32, i32, i32
  }
  func.func @transform_11(%arg0: i32, %arg1: i32) -> (i32, i32, i32) {
    %c0_i32 = arith.constant 0 : i32
    %c0_i32_0 = arith.constant 0 : i32
    %c0_i32_1 = arith.constant 0 : i32
    return %arg1, %c0_i32, %c0_i32_0 : i32, i32, i32
  }
  func.func @transform_12(%arg0: i32, %arg1: i32) -> (i32, i32, i32) {
    %c0_i32 = arith.constant 0 : i32
    %c0_i32_0 = arith.constant 0 : i32
    %c0_i32_1 = arith.constant 0 : i32
    return %arg1, %c0_i32, %c0_i32_0 : i32, i32, i32
  }
  func.func @transform_13(%arg0: i32, %arg1: i32) -> (i32, i32, i32) {
    %c0_i32 = arith.constant 0 : i32
    %c0_i32_0 = arith.constant 0 : i32
    %c0_i32_1 = arith.constant 0 : i32
    return %arg1, %c0_i32, %c0_i32_0 : i32, i32, i32
  }
  func.func @transform_14(%arg0: i32, %arg1: i32) -> (i32, i32, i32) {
    %c0_i32 = arith.constant 0 : i32
    %c0_i32_0 = arith.constant 0 : i32
    %c0_i32_1 = arith.constant 0 : i32
    return %arg1, %c0_i32, %c0_i32_0 : i32, i32, i32
  }
  func.func @transform_15(%arg0: i32, %arg1: i32) -> (i32, i32, i32) {
    %c0_i32 = arith.constant 0 : i32
    %c0_i32_0 = arith.constant 0 : i32
    %c0_i32_1 = arith.constant 0 : i32
    return %arg1, %c0_i32, %c0_i32_0 : i32, i32, i32
  }
  func.func @transform_16(%arg0: i32, %arg1: i32) -> (i32, i32) {
    %c0_i32 = arith.constant 0 : i32
    %c0_i32_0 = arith.constant 0 : i32
    return %arg0, %c0_i32 : i32, i32
  }
}

</mosaic_0001>

<bundles_post_ra>
// kernel: dpr_biencoder_forward.2
= control target key start
LH: loop header
LB: loop body
LE: loop exit
PB: predicated region body
PF: predicated region fallthrough
CT: control target
= control target key end

     0   :  { %s1596_s21 = smov 0   ;;  %s1598_s22 = smov 0   ;;  %s1824_s0 = inlined_call_operand.vmem [shape: f32[16,32], index: 0, kind: input, shape index: {}]   ;;  %s1825_s1 = inlined_call_operand.vmem [shape: f32[16,8], index: 1, kind: input, shape index: {}]   ;;  %s1826_s2 = inlined_call_operand.vmem [shape: f32[1,32], index: 2, kind: input, shape index: {}]   ;;  %s1827_s3 = inlined_call_operand.vmem [shape: f32[1,32], index: 3, kind: input, shape index: {}]   ;;  %s1828_s4 = inlined_call_operand.vmem [shape: f32[2,32,96], index: 4, kind: input, shape index: {}]   ;;  %s1829_s5 = inlined_call_operand.vmem [shape: f32[2,1,96], index: 5, kind: input, shape index: {}]   ;;  %s1830_s6 = inlined_call_operand.vmem [shape: f32[2,32,32], index: 6, kind: input, shape index: {}]   ;;  %s1831_s7 = inlined_call_operand.vmem [shape: f32[2,1,32], index: 7, kind: input, shape index: {}]   ;;  %s1832_s8 = inlined_call_operand.vmem [shape: f32[2,1,32], index: 8, kind: input, shape index: {}]   ;;  %s1833_s9 = inlined_call_operand.vmem [shape: f32[2,1,32], index: 9, kind: input, shape index: {}]   ;;  %s1834_s10 = inlined_call_operand.vmem [shape: f32[2,32,64], index: 10, kind: input, shape index: {}]   ;;  %s1835_s11 = inlined_call_operand.vmem [shape: f32[2,1,64], index: 11, kind: input, shape index: {}]   ;;  %s1836_s12 = inlined_call_operand.vmem [shape: f32[2,64,32], index: 12, kind: input, shape index: {}]   ;;  %s1837_s13 = inlined_call_operand.vmem [shape: f32[2,1,32], index: 13, kind: input, shape index: {}]   ;;  %s1838_s14 = inlined_call_operand.vmem [shape: f32[2,1,32], index: 14, kind: input, shape index: {}]   ;;  %s1839_s15 = inlined_call_operand.vmem [shape: f32[2,1,32], index: 15, kind: input, shape index: {}]   ;;  %s1840_s16 = inlined_call_operand.vmem [shape: f32[16,32], index: 16, kind: output, shape index: {}]  }
   0x1   :  { %1846 = sst [smem:[#allocation9_spill]] %s1824_s0  ;;  %s1600_s23 = smov 0  }
   0x2   :  { %1847 = sst [smem:[#allocation10_spill]] %s1825_s1  ;;  %s1602_s24 = smov 0  }
   0x3   :  { %1848 = sst [smem:[#allocation11_spill]] %s1826_s2  ;;  %s1604_s25 = smov 0  }
   0x4   :  { %1849 = sst [smem:[#allocation12_spill]] %s1827_s3 }
   0x5   :  { %1850 = sst [smem:[#allocation13_spill]] %s1828_s4 }
   0x6   :  { %1851 = sst [smem:[#allocation14_spill]] %s1830_s6 }
   0x7   :  { %1852 = sst [smem:[#allocation15_spill]] %s1834_s10 }
   0x8   :  { %1853 = sst [smem:[#allocation16_spill]] %s1840_s16 }
   0x9 LB: > { %1854 = sst [smem:[#allocation2_spill]] %s1486_s21  ;;  %s35_s26 = sadd.s32 1, %s1494_s23  ;;  %s1502_s25 = sphi %s1604_s25, %s26_s25   ;;  %s1498_s24 = sphi %s1602_s24, %s1882_s24   ;;  %s1494_s23 = sphi %s1600_s23, %s1881_s23   ;;  %s1490_s22 = sphi %s1598_s22, %s1880_s22   ;;  %s1486_s21 = sphi %s1596_s21, %s1879_s21  }
   0xa   : > { %1855 = sst [smem:[#allocation3_spill]] %s1494_s23  ;;  %s38_s27 = sadd.s32 1, %s1498_s24 }
   0xb   : > { %1856 = sst [smem:[#allocation4_spill]] %s1498_s24  ;;  %p36_p0 = scmp.ge.s32.totalorder %s35_s26, 2 }
   0xc   : > { %1857 = sst [smem:[#allocation5_spill]] %s1502_s25  ;;  %p1357_p1 = scmp.ge.s32.totalorder %s1502_s25, 1 }
   0xd   : > { %p586_p2 = scmp.lt.s32.totalorder %s1502_s25, 5  ;;  %s1884_s26 = smov (%p36_p0, %s35_s26), 0 }
   0xe   : > { %1858 = sst [smem:[#allocation6_spill]] %s1884_s26  ;;  %s1886_s27 = smov (!%p36_p0, %s38_s27), %s1498_s24 }
   0xf   : > { %p587_p3 = pnand %p1357_p1, %p586_p2  ;;  %p40_p4 = scmp.ge.s32.totalorder %s1886_s27, 2 }
  0x11   : > { %s1888_s27 = smov (%p40_p4, %s1886_s27), 0  ;;  %590 = sbr.rel (%p587_p3) target bundleno = 2047 (0x7ff), region = 84 }
  0x12   : > { %1859 = sst [smem:[#allocation7_spill]] %s1888_s27 }
  0x16   : > { %p682_p5 = scmp.lt.s32.totalorder %s1490_s22, 1  ;;  %p690_p6 = scmp.lt.s32.totalorder %s1486_s21, 1 }
  0x17   : > { %s1860_s17 = sld [smem:[#allocation9_spill]] }
  0x18   : > { %s1890_s22 = smov (!%p682_p5, %s1490_s22), 1  ;;  %s1862_s4 = sld [smem:[#allocation13_spill]] }
  0x19   : > { %s1630_s28 = scalar_select %p690_p6, %s1486_s21, 1 }
  0x1a   : > { %s1632_s29 = sshll.u32 %s1890_s22, 3  ;;  %s1863_s6 = sld [smem:[#allocation14_spill]] }
  0x1b   : > { %s1383_s26 = sshll.u32 %s1630_s28, 5  ;;  %s1865_s10 = sld [smem:[#allocation15_spill]] }
  0x1c   : > { %s727_s23 = scalar_lea.vmem %s1837_s13, %s1630_s28  ;;  %s730_s3 = scalar_lea.vmem %s1838_s14, %s1630_s28 }
  0x1d   : > { %s685_s18 = scalar_lea.vmem %s1860_s17, %s1632_s29  ;;  %s733_s1 = scalar_lea.vmem %s1839_s15, %s1630_s28 }
  0x1e   : > { %s1650_s2 = scalar_lea.vmem %s1862_s4, %s1383_s26  ;;  %s1867_s16 = sld [smem:[#allocation2_spill]] }
  0x20   : > { %s1655_s0 = scalar_lea.vmem %s1863_s6, %s1383_s26  ;;  %s1866_s6 = sld [smem:[#allocation16_spill]] }
  0x21   : > { %1864 = sst [smem:[#allocation8_spill]] %s1655_s0  ;;  %s1672_s4 = scalar_lea.vmem %s1865_s10, %s1383_s26 }
  0x22   : > { %s1386_s0 = sshll.u32 %s1630_s28, 6 }
  0x23   : > { %s1682_s19 = scalar_lea.vmem %s1836_s12, %s1386_s0 }
  0x24   : > { %p1369_p7 = scmp.ne.s32.totalorder %s1867_s16, 0 }
  0x25   : > { %s1869_s27 = sld [smem:[#allocation12_spill]] (!%p1369_p7) }
  0x26   : > { %s1700_s10 = scalar_lea.vmem %s1866_s6, %s1632_s29  ;;  %741 = sbr.rel (%p1369_p7) target bundleno = 313 (0x139), region = 88 }
  0x2b   : > { %v742_v0 = vld [vmem:[%s685_s18] sm:$0xff]  ;;  %vm745_vm0 = vcmask 261120   ;;  %v1504_v2 = vmov 32.0   ;;  %s1868_s18 = sld [smem:[#allocation11_spill]] }
  0x2c   : > { %v746_v1 = vsel %vm745_vm0, %v742_v0, 0.0  ;;  %1436 = vrcp.f32 %v1504_v2  ;;  %v1435_v25 = vld [vmem:[%s1869_s27] ss:$0 sm:$0xff] }
  0x2d   : > { %747 = vadd.xlane.f32.xlu0 %v746_v1 }
  0x31   : > { %v1434_v23 = vld [vmem:[%s1868_s18] ss:$0 sm:$0xff] }
  0x32   : > { %v1437_v3 = vpop.eup %1436 }
  0x33   : > { %v750_v4 = vmul.f32 32.0, %v1437_v3  ;;  %vm754_vm1 = vweird.f32 %v1437_v3 }
  0x35   : > { %v751_v5 = vsub.f32 1.0, %v750_v4 }
  0x37   : > { %v752_v6 = vmul.f32 %v1437_v3, %v751_v5 }
  0x39   : > { %v753_v7 = vadd.f32 %v1437_v3, %v752_v6 }
  0x3b   : > { %v755_v8 = vsel %vm754_vm1, %v1437_v3, %v753_v7 }
  0xa0   : > { %v748_v9 = vpop.xlane.xlu0 %747 }
  0xa1   : > { %v756_v10 = vmul.f32 %v755_v8, %v748_v9 }
  0xa3   : > { %v757_v11 = vsub.f32 %v742_v0, %v756_v10 }
  0xa5   : > { %v758_v12 = vmul.f32 %v757_v11, %v757_v11 }
  0xa7   : > { %v759_v13 = vsel %vm745_vm0, %v758_v12, 0.0 }
  0xa8   : > { %760 = vadd.xlane.f32.xlu0 %v759_v13 }
 0x11b   : > { %v761_v14 = vpop.xlane.xlu0 %760 }
 0x11c   : > { %v762_v15 = vmul.f32 %v761_v14, %v755_v8 }
 0x11e   : > { %v763_v16 = vadd.f32 1e-12, %v762_v15 }
 0x120   : > { %1438 = vrsqrt.f32 %v763_v16  ;;  %vm770_vm3 = vweird.f32 %v763_v16 }
 0x126   : > { %v1439_v17 = vpop.eup %1438 }
 0x127   : > { %v765_v18 = vmul.f32 %v1439_v17, %v763_v16  ;;  %vm771_vm2 = vweird.f32 %v1439_v17 }
 0x128   : > { %vm772_vm4 = vmor %vm770_vm3, %vm771_vm2 }
 0x129   : > { %v766_v19 = vmul.f32 %v1439_v17, %v765_v18 }
 0x12b   : > { %v767_v20 = vmul.f32 0.5, %v766_v19 }
 0x12d   : > { %v768_v21 = vsub.f32 1.5, %v767_v20 }
 0x12f   : > { %v769_v22 = vmul.f32 %v1439_v17, %v768_v21 }
 0x131   : > { %v773_v24 = vsel %vm772_vm4, %v1439_v17, %v769_v22 }
 0x132   : > { %v774_v26 = vmul.f32 %v773_v24, %v757_v11 }
 0x134   : > { %v778_v27 = vmul.f32 %v1434_v23, %v774_v26 }
 0x136   : > { %v782_v28 = vadd.f32 %v1435_v25, %v778_v27 }
 0x138   : > { %783 = vst.msk [vmem:[%s1700_s10] sm:$0xff] %vm745_vm0, %v782_v28 }
 0x139 PF: > { %v788_v29 = vld [vmem:[%s1650_s2 + $0x18] sm:$0xff]  ;;  %v787_v30 = vld [vmem:[%s1650_s2 + $0x10] sm:$0xff]  ;;  %v786_v31 = vld [vmem:[%s1650_s2 + $0x8] sm:$0xff]  ;;  %vm793_vm5 = vcmask 261120   ;;  %s1870_s26 = scalar_lea.vmem %s1829_s5, %s1630_s28  ;;  %s1505_s22 = smov 96   ;;  %vm827_vm6 = vcmask 130048  }
 0x13a   : > { %809 = vmatpush.msra.mxu0 %v788_v29  ;;  %v785_v32 = vld [vmem:[%s1650_s2] sm:$0xff]  ;;  %s1506_s21 = smov 112   ;;  %s1507_s2 = smov 80   ;;  %vm853_vm7 = vcmask 64512   ;;  %v1510_v15 = vmov 32.0   ;;  %v1050_v27 = vld [vmem:[%s1672_s4 + $0x18] sm:$0xff] }
 0x13b   : > { %v1440_v34 = vld [vmem:[%s1870_s26] ss:$0 sm:$0xff]  ;;  %s1508_s30 = smov 64   ;;  %s1509_s16 = smov 48   ;;  %v1049_v28 = vld [vmem:[%s1672_s4 + $0x10] sm:$0xff]  ;;  %v1048_v29 = vld [vmem:[%s1672_s4 + $0x8] sm:$0xff] }
 0x13c   : > { %810 = vmatpush.msra.mxu0 %v787_v30  ;;  %s1871_s18 = sld [smem:[#allocation10_spill]]  ;;  %s1874_s20 = scalar_lea.vmem %s1831_s7, %s1630_s28  ;;  %v1047_v30 = vld [vmem:[%s1672_s4] sm:$0xff]  ;;  %vm1099_vm12 = vcmask 523264  }
 0x13d   : > { %s1873_s17 = sld [smem:[#allocation8_spill]]  ;;  %v1441_v9 = vld [vmem:[%s1874_s20] ss:$0 sm:$0xff]  ;;  %s1875_s26 = scalar_lea.vmem %s1832_s8, %s1630_s28 }
 0x13e   : > { %811 = vmatpush.msra.mxu0 %v786_v31  ;;  %s1877_s6 = scalar_lea.vmem %s1835_s11, %s1630_s28 }
 0x13f   : > { %v1718_v33 = vld [vmem:[%s1700_s10] sm:$0xff] }
 0x140   : > { %812 = vmatpush.msra.mxu0 %v785_v32 }
 0x141   : > { %1370 = vmatmul.msk.f32.vlgmr.msra.gmra.mxu0 %vm793_vm5, %v1718_v33 }
 0x142   : > { %s1872_s0 = scalar_lea.vmem %s1871_s18, %s1632_s29  ;;  %1070 = vmatpush.msrb.mxu0 %v1050_v27 }
 0x143   : > { %v817_v43 = vld [vmem:[%s1872_s0] sm:$0xff]  ;;  %v819_v60 = vld [vmem:[%s1873_s17 + $0x8] sm:$0xff]  ;;  %v821_v4 = vld [vmem:[%s1873_s17 + $0x18] sm:$0xff] }
 0x144   : > { %v818_v61 = vld [vmem:[%s1873_s17] sm:$0xff]  ;;  %v820_v5 = vld [vmem:[%s1873_s17 + $0x10] sm:$0xff]  ;;  %1071 = vmatpush.msrb.mxu0 %v1049_v28 }
 0x146   : > { %1072 = vmatpush.msrb.mxu0 %v1048_v29 }
 0x148   : > { %1073 = vmatpush.msrb.mxu0 %v1047_v30 }
 0x1be   : > { %v814_v35 = vpop.f32.mrf.mxu0 }
 0x1bf   : > { %v815_v36 = vadd.f32 %v1440_v34, %v814_v35 }
 0x1c1   : > { %825 = vrot.lane.b32.xlu0 %v815_v36, %s1505_s22  ;;  %v823_v37 = vmul.f32 0.25, %v815_v36 }
 0x1c3   : > { %918 = vrot.lane.b32.xlu1 %v823_v37, %s1506_s21 }
 0x1c9   : > { %920 = vrot.lane.b32.xlu0 %v815_v36, %s1507_s2  ;;  %s1876_s2 = scalar_lea.vmem %s1833_s9, %s1630_s28 }
 0x1d1   : > { %865 = vrot.lane.b32.xlu0 %v815_v36, %s1508_s30 }
 0x1d9   : > { %957 = vrot.lane.b32.xlu0 %v815_v36, %s1509_s16 }
 0x233   : > { %v826_v38 = vpop.permute.xlu0 %825 }
 0x234   : > { %1371 = vmatpush.xpose.msk.msra.mxu1 %vm827_vm6, %v826_v38 }
 0x235   : > { %v919_v40 = vpop.permute.xlu1 %918 }
 0x237   : > { %1372 = vmatmul.msk.f32.vlgmr.msra.gmra.mxu1 %vm827_vm6, %v823_v37 }
 0x23b   : > { %v921_v39 = vpop.permute.xlu0 %920 }
 0x23c   : > { %1375 = vmatpush.xpose.msk.msra.mxu2 %vm827_vm6, %v921_v39 }
 0x23f   : > { %1376 = vmatmul.msk.f32.vlgmr.msra.gmra.mxu2 %vm827_vm6, %v919_v40  ;;  %v1442_v40 = vld [vmem:[%s1875_s26] ss:$0 sm:$0xff] }
 0x243   : > { %v866_v41 = vpop.permute.xlu0 %865 }
 0x244   : > { %886 = vmatpush.msra.mxu3 %v866_v41 }
 0x246   : > { %908 = vmatpush.msrb.mxu3 %v819_v60 }
 0x248   : > { %909 = vmatpush.msrb.mxu3 %v818_v61 }
 0x24b   : > { %v958_v42 = vpop.permute.xlu0 %957 }
 0x24c   : > { %978 = vmatpush.msrb.mxu1 %v958_v42 }
 0x2b4   : > { %v850_v44 = vpop.f32.mrf.mxu1 }
 0x2b5   : > { %v851_v45 = vadd.f32 %v850_v44, %v817_v43 }
 0x2b7   : > { %v854_v46 = vsel %vm853_vm7, %v851_v45, -inf }
 0x2b8   : > { %855 = vmax.xlane.f32.xlu1 %v854_v46  ;;  %v1094_v46 = vld [vmem:[%s1682_s19 + $0x38] sm:$0xff] }
 0x2b9   : > { %1111 = vmatpush.msrb.mxu2 %v1094_v46 }
 0x2c2   : > { %v943_v47 = vpop.f32.mrf.mxu2 }
 0x2c3   : > { %v944_v48 = vadd.f32 %v943_v47, %v817_v43  ;;  %v1443_v43 = vld [vmem:[%s1876_s2] ss:$0 sm:$0xff]  ;;  %v1093_v47 = vld [vmem:[%s1682_s19 + $0x30] sm:$0xff] }
 0x2c4   : > { %1112 = vmatpush.msrb.mxu2 %v1093_v47 }
 0x2c5   : > { %v946_v49 = vsel %vm853_vm7, %v944_v48, -inf }
 0x2c6   : > { %947 = vmax.xlane.f32.xlu2 %v946_v49  ;;  %v1091_v49 = vld [vmem:[%s1682_s19 + $0x20] sm:$0xff] }
 0x32b   : > { %v856_v50 = vpop.xlane.xlu1 %855 }
 0x32c   : > { %v857_v51 = vsub.f32 %v851_v45, %v856_v50  ;;  %v1090_v50 = vld [vmem:[%s1682_s19 + $0x18] sm:$0xff] }
 0x32e   : > { %v858_v52 = vmul.f32 1.442695, %v857_v51  ;;  %v1089_v51 = vld [vmem:[%s1682_s19 + $0x10] sm:$0xff] }
 0x330   : > { %1448 = vpow2.f32 %v858_v52  ;;  %v1088_v52 = vld [vmem:[%s1682_s19 + $0x8] sm:$0xff] }
 0x336   : > { %v1449_v53 = vpop.eup %1448 }
 0x337   : > { %v860_v54 = vsel %vm853_vm7, %v1449_v53, 0.0 }
 0x338   : > { %861 = vadd.xlane.f32.xlu2 %v860_v54  ;;  %v1444_v54 = vld [vmem:[%s1877_s6] ss:$0 sm:$0xff] }
 0x339   : > { %v948_v55 = vpop.xlane.xlu2 %947 }
 0x33a   : > { %v949_v56 = vsub.f32 %v944_v48, %v948_v55  ;;  %v1092_v48 = vld [vmem:[%s1682_s19 + $0x28] sm:$0xff] }
 0x33b   : > { %1113 = vmatpush.msrb.mxu2 %v1092_v48 }
 0x33c   : > { %v950_v57 = vmul.f32 1.442695, %v949_v56 }
 0x33d   : > { %1114 = vmatpush.msrb.mxu2 %v1091_v49 }
 0x33e   : > { %1450 = vpow2.f32 %v950_v57 }
 0x33f   : > { %1115 = vmatpush.msrb.mxu2 %v1090_v50 }
 0x341   : > { %1116 = vmatpush.msrb.mxu2 %v1089_v51 }
 0x343   : > { %1117 = vmatpush.msrb.mxu2 %v1088_v52 }
 0x344   : > { %v1451_v58 = vpop.eup %1450 }
 0x345   : > { %v952_v59 = vsel %vm853_vm7, %v1451_v58, 0.0 }
 0x346   : > { %953 = vadd.xlane.f32.xlu2 %v952_v59 }
 0x3ab   : > { %v862_v62 = vpop.xlane.xlu2 %861 }
 0x3ac   : > { %1452 = vrcp.f32 %v862_v62 }
 0x3b2   : > { %v1453_v63 = vpop.eup %1452 }
 0x3b3   : > { %v864_v0 = vmul.f32 %v1453_v63, %v1449_v53  ;;  %v1087_v53 = vld [vmem:[%s1682_s19] sm:$0xff] }
 0x3b4   : > { %1118 = vmatpush.msrb.mxu2 %v1087_v53 }
 0x3b5   : > { %1373 = vmatmul.msk.f32.vlgmr.msra.gmra.mxu3 %vm853_vm7, %v864_v0 }
 0x3b6   : > { %1000 = vmatpush.msra.mxu3 %v821_v4 }
 0x3b8   : > { %1001 = vmatpush.msra.mxu3 %v820_v5 }
 0x3b9   : > { %v954_v1 = vpop.xlane.xlu2 %953 }
 0x3ba   : > { %1454 = vrcp.f32 %v954_v1 }
 0x3bb   : > { %1456 = vrcp.f32 %v1510_v15 }
 0x3c0   : > { %v1455_v2 = vpop.eup %1454 }
 0x3c1   : > { %v956_v3 = vmul.f32 %v1455_v2, %v1451_v58  ;;  %v1457_v16 = vpop.eup %1456  ;;  %v1445_v2 = vld [vmem:[%s727_s23] ss:$0 sm:$0xff] }
 0x3c2   : > { %v1014_v17 = vmul.f32 32.0, %v1457_v16  ;;  %vm1018_vm8 = vweird.f32 %v1457_v16 }
 0x3c3   : > { %1377 = vmatmul.msk.f32.vlgmr.msrb.gmra.mxu1 %vm853_vm7, %v956_v3 }
 0x3c4   : > { %v1015_v18 = vsub.f32 1.0, %v1014_v17 }
 0x3c6   : > { %v1016_v19 = vmul.f32 %v1457_v16, %v1015_v18 }
 0x3c8   : > { %v1017_v20 = vadd.f32 %v1457_v16, %v1016_v19 }
 0x3ca   : > { %v1755_v21 = vsel %vm1018_vm8, %v1457_v16, %v1017_v20 }
 0x438   : > { %v888_v6 = vpop.f32.mrf.mxu3 }
 0x439   : > { %1374 = vmatmul.msk.f32.vlgmr.msrb.gmra.mxu3 %vm827_vm6, %v888_v6 }
 0x440   : > { %v980_v7 = vpop.f32.mrf.mxu1 }
 0x441   : > { %1378 = vmatmul.msk.f32.vlgmr.msra.gmra.mxu3 %vm827_vm6, %v980_v7 }
 0x4bc   : > { %v911_v8 = vpop.f32.mrf.mxu3 }
 0x4bd   : > { %v917_v10 = vadd.f32 %v1441_v9, %v911_v8 }
 0x4c4   : > { %v1003_v11 = vpop.f32.mrf.mxu3 }
 0x4c5   : > { %v1006_v12 = vadd.f32 %v1003_v11, %v917_v10 }
 0x4c7   : > { %v1007_v13 = vadd.f32 %v1006_v12, %v1718_v33 }
 0x4c9   : > { %v1010_v14 = vsel %vm793_vm5, %v1007_v13, 0.0 }
 0x4ca   : > { %1011 = vadd.xlane.f32.xlu2 %v1010_v14 }
 0x53d   : > { %v1012_v22 = vpop.xlane.xlu2 %1011 }
 0x53e   : > { %v1020_v23 = vmul.f32 %v1755_v21, %v1012_v22  ;;  %v1446_v22 = vld [vmem:[%s730_s3] ss:$0 sm:$0xff] }
 0x540   : > { %v1021_v24 = vsub.f32 %v1007_v13, %v1020_v23 }
 0x542   : > { %v1022_v25 = vmul.f32 %v1021_v24, %v1021_v24 }
 0x544   : > { %v1023_v26 = vsel %vm793_vm5, %v1022_v25, 0.0 }
 0x545   : > { %1024 = vadd.xlane.f32.xlu0 %v1023_v26 }
 0x5b8   : > { %v1025_v31 = vpop.xlane.xlu0 %1024 }
 0x5b9   : > { %v1026_v32 = vmul.f32 %v1025_v31, %v1755_v21 }
 0x5bb   : > { %v1027_v33 = vadd.f32 1e-12, %v1026_v32 }
 0x5bd   : > { %1458 = vrsqrt.f32 %v1027_v33  ;;  %vm1034_vm10 = vweird.f32 %v1027_v33 }
 0x5c3   : > { %v1459_v34 = vpop.eup %1458 }
 0x5c4   : > { %v1029_v35 = vmul.f32 %v1459_v34, %v1027_v33  ;;  %vm1035_vm9 = vweird.f32 %v1459_v34 }
 0x5c5   : > { %vm1036_vm11 = vmor %vm1034_vm10, %vm1035_vm9 }
 0x5c6   : > { %v1030_v36 = vmul.f32 %v1459_v34, %v1029_v35 }
 0x5c8   : > { %v1031_v37 = vmul.f32 0.5, %v1030_v36 }
 0x5ca   : > { %v1032_v38 = vsub.f32 1.5, %v1031_v37 }
 0x5cc   : > { %v1033_v39 = vmul.f32 %v1459_v34, %v1032_v38 }
 0x5ce   : > { %v1037_v41 = vsel %vm1036_vm11, %v1459_v34, %v1033_v39 }
 0x5cf   : > { %v1038_v42 = vmul.f32 %v1037_v41, %v1021_v24 }
 0x5d1   : > { %v1042_v44 = vmul.f32 %v1442_v40, %v1038_v42 }
 0x5d3   : > { %v1046_v45 = vadd.f32 %v1443_v43, %v1042_v44 }
 0x5d5   : > { %1379 = vmatmul.msk.f32.vlgmr.msrb.gmra.mxu0 %vm793_vm5, %v1046_v45 }
 0x652   : > { %v1075_v55 = vpop.f32.mrf.mxu0 }
 0x653   : > { %v1076_v56 = vadd.f32 %v1444_v54, %v1075_v55 }
 0x655   : > { %v1079_v57 = vmul.f32 0.044715, %v1076_v56  ;;  %v1078_v63 = vmul.f32 0.5, %v1076_v56 }
 0x657   : > { %v1080_v58 = vmul.f32 %v1079_v57, %v1076_v56 }
 0x659   : > { %v1081_v59 = vmul.f32 %v1080_v58, %v1076_v56 }
 0x65b   : > { %v1082_v60 = vadd.f32 %v1081_v59, %v1076_v56 }
 0x65d   : > { %v1083_v61 = vmul.f32 0.7978846, %v1082_v60 }
 0x65f   : > { %1460 = vtanh.f32 %v1083_v61 }
 0x665   : > { %v1461_v62 = vpop.eup %1460 }
 0x666   : > { %v1085_v0 = vadd.f32 1.0, %v1461_v62 }
 0x668   : > { %v1086_v1 = vmul.f32 %v1085_v0, %v1078_v63 }
 0x66a   : > { %1380 = vmatmul.msk.f32.vlgmr.msrb.gmra.mxu2 %vm1099_vm12, %v1086_v1 }
 0x6ed   : > { %v1120_v3 = vpop.f32.mrf.mxu2 }
 0x6ee   : > { %v1121_v4 = vadd.f32 %v1445_v2, %v1120_v3 }
 0x6f0   : > { %v1123_v5 = vadd.f32 %v1121_v4, %v1046_v45 }
 0x6f2   : > { %v1126_v6 = vsel %vm793_vm5, %v1123_v5, 0.0 }
 0x6f3   : > { %1127 = vadd.xlane.f32.xlu2 %v1126_v6 }
 0x766   : > { %v1128_v7 = vpop.xlane.xlu2 %1127 }
 0x767   : > { %v1129_v8 = vmul.f32 %v1128_v7, %v1755_v21 }
 0x769   : > { %v1130_v9 = vsub.f32 %v1123_v5, %v1129_v8 }
 0x76b   : > { %v1131_v10 = vmul.f32 %v1130_v9, %v1130_v9 }
 0x76d   : > { %v1132_v11 = vsel %vm793_vm5, %v1131_v10, 0.0 }
 0x76e   : > { %1133 = vadd.xlane.f32.xlu2 %v1132_v11 }
 0x7e1   : > { %v1134_v12 = vpop.xlane.xlu2 %1133 }
 0x7e2   : > { %v1135_v13 = vmul.f32 %v1134_v12, %v1755_v21  ;;  %v1447_v21 = vld [vmem:[%s733_s1] ss:$0 sm:$0xff] }
 0x7e4   : > { %v1136_v14 = vadd.f32 1e-12, %v1135_v13 }
 0x7e6   : > { %1462 = vrsqrt.f32 %v1136_v14  ;;  %vm1143_vm14 = vweird.f32 %v1136_v14 }
 0x7ec   : > { %v1463_v15 = vpop.eup %1462 }
 0x7ed   : > { %v1138_v16 = vmul.f32 %v1463_v15, %v1136_v14  ;;  %vm1144_vm13 = vweird.f32 %v1463_v15 }
 0x7ee   : > { %vm1145_vm15 = vmor %vm1143_vm14, %vm1144_vm13 }
 0x7ef   : > { %v1139_v17 = vmul.f32 %v1463_v15, %v1138_v16 }
 0x7f1   : > { %v1140_v18 = vmul.f32 0.5, %v1139_v17 }
 0x7f3   : > { %v1141_v19 = vsub.f32 1.5, %v1140_v18 }
 0x7f5   : > { %v1142_v20 = vmul.f32 %v1463_v15, %v1141_v19 }
 0x7f7   : > { %v1146_v23 = vsel %vm1145_vm15, %v1463_v15, %v1142_v20 }
 0x7f8   : > { %v1147_v24 = vmul.f32 %v1146_v23, %v1130_v9 }
 0x7fa   : > { %v1151_v25 = vmul.f32 %v1446_v22, %v1147_v24 }
 0x7fc   : > { %v1155_v26 = vadd.f32 %v1447_v21, %v1151_v25 }
 0x7fe   : > { %1156 = vst.msk [vmem:[%s1700_s10] sm:$0xff] %vm793_vm5, %v1155_v26 }
 0x7ff PF: > { %s1878_s29 = sld [smem:[#allocation5_spill]] }
 0x800   : > { %s1879_s21 = sld [smem:[#allocation3_spill]] }
 0x801   : > { %s1880_s22 = sld [smem:[#allocation4_spill]] }
 0x802   : > { %s1881_s23 = sld [smem:[#allocation6_spill]] }
 0x803   : > { %s1882_s24 = sld [smem:[#allocation7_spill]] }
 0x805   : > { %s26_s25 = sadd.s32 1, %s1878_s29  }
 0x806   : > { %p23_p8 = scmp.ge.s32.totalorder %s26_s25, 6  }
 0x808   :  { %25 = sbr.rel (!%p23_p8) target bundleno = 9 (0x9), region = 157 }

// kernel: dpr_biencoder_forward.3
= control target key start
LH: loop header
LB: loop body
LE: loop exit
PB: predicated region body
PF: predicated region fallthrough
CT: control target
= control target key end

     0   :  { %s1894_s21 = smov 0   ;;  %s1896_s22 = smov 0   ;;  %s2165_s0 = inlined_call_operand.vmem [shape: f32[32,32], index: 0, kind: input, shape index: {}]   ;;  %s2166_s1 = inlined_call_operand.vmem [shape: f32[32,8], index: 1, kind: input, shape index: {}]   ;;  %s2167_s2 = inlined_call_operand.vmem [shape: f32[1,32], index: 2, kind: input, shape index: {}]   ;;  %s2168_s3 = inlined_call_operand.vmem [shape: f32[1,32], index: 3, kind: input, shape index: {}]   ;;  %s2169_s4 = inlined_call_operand.vmem [shape: f32[2,32,96], index: 4, kind: input, shape index: {}]   ;;  %s2170_s5 = inlined_call_operand.vmem [shape: f32[2,1,96], index: 5, kind: input, shape index: {}]   ;;  %s2171_s6 = inlined_call_operand.vmem [shape: f32[2,32,32], index: 6, kind: input, shape index: {}]   ;;  %s2172_s7 = inlined_call_operand.vmem [shape: f32[2,1,32], index: 7, kind: input, shape index: {}]   ;;  %s2173_s8 = inlined_call_operand.vmem [shape: f32[2,1,32], index: 8, kind: input, shape index: {}]   ;;  %s2174_s9 = inlined_call_operand.vmem [shape: f32[2,1,32], index: 9, kind: input, shape index: {}]   ;;  %s2175_s10 = inlined_call_operand.vmem [shape: f32[2,32,64], index: 10, kind: input, shape index: {}]   ;;  %s2176_s11 = inlined_call_operand.vmem [shape: f32[2,1,64], index: 11, kind: input, shape index: {}]   ;;  %s2177_s12 = inlined_call_operand.vmem [shape: f32[2,64,32], index: 12, kind: input, shape index: {}]   ;;  %s2178_s13 = inlined_call_operand.vmem [shape: f32[2,1,32], index: 13, kind: input, shape index: {}]   ;;  %s2179_s14 = inlined_call_operand.vmem [shape: f32[2,1,32], index: 14, kind: input, shape index: {}]   ;;  %s2180_s15 = inlined_call_operand.vmem [shape: f32[2,1,32], index: 15, kind: input, shape index: {}]   ;;  %s2181_s16 = inlined_call_operand.vmem [shape: f32[32,32], index: 16, kind: output, shape index: {}]  }
   0x1   :  { %2187 = sst [smem:[#allocation9_spill]] %s2165_s0  ;;  %s1898_s23 = smov 0  }
   0x2   :  { %2188 = sst [smem:[#allocation10_spill]] %s2166_s1  ;;  %s1900_s24 = smov 0  }
   0x3   :  { %2189 = sst [smem:[#allocation11_spill]] %s2167_s2  ;;  %s1902_s25 = smov 0  }
   0x4   :  { %2190 = sst [smem:[#allocation12_spill]] %s2168_s3 }
   0x5   :  { %2191 = sst [smem:[#allocation13_spill]] %s2169_s4 }
   0x6   :  { %2192 = sst [smem:[#allocation14_spill]] %s2171_s6 }
   0x7   :  { %2193 = sst [smem:[#allocation15_spill]] %s2175_s10 }
   0x8   :  { %2194 = sst [smem:[#allocation16_spill]] %s2176_s11 }
   0x9   :  { %2195 = sst [smem:[#allocation17_spill]] %s2180_s15 }
   0xa   :  { %2196 = sst [smem:[#allocation18_spill]] %s2181_s16 }
   0xb LB: > { %2197 = sst [smem:[#allocation2_spill]] %s1784_s21  ;;  %s35_s26 = sadd.s32 1, %s1792_s23  ;;  %s1800_s25 = sphi %s1902_s25, %s26_s25   ;;  %s1796_s24 = sphi %s1900_s24, %s2227_s24   ;;  %s1792_s23 = sphi %s1898_s23, %s2226_s23   ;;  %s1788_s22 = sphi %s1896_s22, %s2225_s22   ;;  %s1784_s21 = sphi %s1894_s21, %s2224_s21  }
   0xc   : > { %2198 = sst [smem:[#allocation3_spill]] %s1792_s23  ;;  %s38_s27 = sadd.s32 1, %s1796_s24 }
   0xd   : > { %2199 = sst [smem:[#allocation4_spill]] %s1796_s24  ;;  %p36_p0 = scmp.ge.s32.totalorder %s35_s26, 2 }
   0xe   : > { %2200 = sst [smem:[#allocation5_spill]] %s1800_s25  ;;  %p1625_p1 = scmp.ge.s32.totalorder %s1800_s25, 1 }
   0xf   : > { %p590_p2 = scmp.lt.s32.totalorder %s1800_s25, 5  ;;  %s2229_s26 = smov (%p36_p0, %s35_s26), 0 }
  0x10   : > { %2201 = sst [smem:[#allocation6_spill]] %s2229_s26  ;;  %s2231_s27 = smov (!%p36_p0, %s38_s27), %s1796_s24 }
  0x11   : > { %p591_p3 = pnand %p1625_p1, %p590_p2  ;;  %p40_p4 = scmp.ge.s32.totalorder %s2231_s27, 2 }
  0x13   : > { %s2233_s27 = smov (%p40_p4, %s2231_s27), 0  ;;  %594 = sbr.rel (%p591_p3) target bundleno = 2453 (0x995), region = 84 }
  0x14   : > { %2202 = sst [smem:[#allocation7_spill]] %s2233_s27 }
  0x18   : > { %s1626_s28 = sshll.u32 %s1788_s22, 1  ;;  %p701_p5 = scmp.lt.s32.totalorder %s1784_s21, 1 }
  0x19   : > { %p690_p6 = scmp.lt.s32.totalorder %s1626_s28, 3  ;;  %s2203_s4 = sld [smem:[#allocation13_spill]] }
  0x1a   : > { %s1928_s29 = scalar_select %p701_p5, %s1784_s21, 1 }
  0x1b   : > { %s2235_s28 = smov (!%p690_p6, %s1626_s28), 3  ;;  %s2204_s23 = sld [smem:[#allocation9_spill]] }
  0x1c   : > { %s1665_s30 = sshll.u32 %s1928_s29, 5  ;;  %s1627_s19 = sshll.u32 %s2235_s28, 3 }
  0x1d   : > { %s2205_s1 = sld [smem:[#allocation10_spill]]  ;;  %s738_s20 = scalar_lea.vmem %s2178_s13, %s1928_s29 }
  0x1e   : > { %s2206_s6 = sld [smem:[#allocation14_spill]]  ;;  %s741_s2 = scalar_lea.vmem %s2179_s14, %s1928_s29 }
  0x1f   : > { %s1938_s27 = scalar_lea.vmem %s2203_s4, %s1665_s30  ;;  %s2208_s10 = sld [smem:[#allocation15_spill]] }
  0x20   : > { %s2210_s26 = sld [smem:[#allocation17_spill]] }
  0x21   : > { %s693_s25 = scalar_lea.vmem %s2204_s23, %s1627_s19  ;;  %s2212_s28 = sld [smem:[#allocation2_spill]] }
  0x23   : > { %s1946_s21 = scalar_lea.vmem %s2205_s1, %s1627_s19 }
  0x24   : > { %s1951_s0 = scalar_lea.vmem %s2206_s6, %s1665_s30  ;;  %s2211_s6 = sld [smem:[#allocation18_spill]] }
  0x25   : > { %2207 = sst [smem:[#allocation8_spill]] %s1951_s0  ;;  %s1968_s1 = scalar_lea.vmem %s2208_s10, %s1665_s30 }
  0x26   : > { %s1668_s0 = sshll.u32 %s1928_s29, 6  ;;  %s744_s10 = scalar_lea.vmem %s2210_s26, %s1928_s29 }
  0x27   : > { %s1982_s4 = scalar_lea.vmem %s2177_s12, %s1668_s0  ;;  %p1640_p7 = scmp.ne.s32.totalorder %s2212_s28, 0 }
  0x28   : > { %s2214_s17 = sld [smem:[#allocation12_spill]] (!%p1640_p7) }
  0x29   : > { %754 = sbr.rel (%p1640_p7) target bundleno = 324 (0x144), region = 88 }
  0x2a   : > { %s1995_s11 = scalar_lea.vmem %s2211_s6, %s1627_s19  ;;  %s2213_s19 = sld [smem:[#allocation11_spill]] (!%p1640_p7) }
  0x2e   : > { %v755_v0 = vld [vmem:[%s693_s25] sm:$0xff]  ;;  %vm759_vm0 = vcmask 261120   ;;  %v756_v2 = vld [vmem:[%s693_s25 + $0x8] sm:$0xff]  ;;  %v1802_v4 = vmov 32.0  }
  0x2f   : > { %v760_v1 = vsel %vm759_vm0, %v755_v0, 0.0  ;;  %v763_v3 = vsel %vm759_vm0, %v756_v2, 0.0  ;;  %1718 = vrcp.f32 %v1802_v4  ;;  %v1717_v38 = vld [vmem:[%s2214_s17] ss:$0 sm:$0xff] }
  0x30   : > { %761 = vadd.xlane.f32.xlu0 %v760_v1  ;;  %v1716_v35 = vld [vmem:[%s2213_s19] ss:$0 sm:$0xff] }
  0x35   : > { %v1719_v5 = vpop.eup %1718 }
  0x36   : > { %v767_v6 = vmul.f32 32.0, %v1719_v5  ;;  %vm771_vm1 = vweird.f32 %v1719_v5 }
  0x38   : > { %764 = vadd.xlane.f32.xlu0 %v763_v3  ;;  %v768_v7 = vsub.f32 1.0, %v767_v6 }
  0x3a   : > { %v769_v8 = vmul.f32 %v1719_v5, %v768_v7 }
  0x3c   : > { %v770_v9 = vadd.f32 %v1719_v5, %v769_v8 }
  0x3e   : > { %v772_v10 = vsel %vm771_vm1, %v1719_v5, %v770_v9 }
  0xa3   : > { %v762_v11 = vpop.xlane.xlu0 %761 }
  0xa4   : > { %v773_v12 = vmul.f32 %v772_v10, %v762_v11 }
  0xa6   : > { %v775_v13 = vsub.f32 %v755_v0, %v773_v12 }
  0xa8   : > { %v777_v14 = vmul.f32 %v775_v13, %v775_v13 }
  0xaa   : > { %v779_v15 = vsel %vm759_vm0, %v777_v14, 0.0 }
  0xab   : > { %780 = vadd.xlane.f32.xlu1 %v779_v15  ;;  %v765_v16 = vpop.xlane.xlu0 %764 }
  0xac   : > { %v774_v17 = vmul.f32 %v772_v10, %v765_v16 }
  0xae   : > { %v776_v18 = vsub.f32 %v756_v2, %v774_v17 }
  0xb0   : > { %v778_v19 = vmul.f32 %v776_v18, %v776_v18 }
  0xb2   : > { %v782_v20 = vsel %vm759_vm0, %v778_v19, 0.0 }
  0xb3   : > { %783 = vadd.xlane.f32.xlu1 %v782_v20 }
 0x11e   : > { %v781_v21 = vpop.xlane.xlu1 %780 }
 0x11f   : > { %v785_v22 = vmul.f32 %v781_v21, %v772_v10 }
 0x121   : > { %v787_v23 = vadd.f32 1e-12, %v785_v22 }
 0x123   : > { %1720 = vrsqrt.f32 %v787_v23  ;;  %vm795_vm3 = vweird.f32 %v787_v23 }
 0x126   : > { %v784_v24 = vpop.xlane.xlu1 %783 }
 0x127   : > { %v786_v25 = vmul.f32 %v784_v24, %v772_v10 }
 0x129   : > { %v1721_v26 = vpop.eup %1720  ;;  %v788_v27 = vadd.f32 1e-12, %v786_v25 }
 0x12a   : > { %v790_v28 = vmul.f32 %v1721_v26, %v787_v23  ;;  %vm796_vm2 = vweird.f32 %v1721_v26 }
 0x12b   : > { %1722 = vrsqrt.f32 %v788_v27  ;;  %vm797_vm4 = vmor %vm795_vm3, %vm796_vm2  ;;  %vm805_vm6 = vweird.f32 %v788_v27 }
 0x12c   : > { %v791_v29 = vmul.f32 %v1721_v26, %v790_v28 }
 0x12e   : > { %v792_v30 = vmul.f32 0.5, %v791_v29 }
 0x130   : > { %v793_v31 = vsub.f32 1.5, %v792_v30 }
 0x131   : > { %v1723_v32 = vpop.eup %1722 }
 0x132   : > { %v794_v33 = vmul.f32 %v1721_v26, %v793_v31  ;;  %v800_v34 = vmul.f32 %v1723_v32, %v788_v27  ;;  %vm806_vm5 = vweird.f32 %v1723_v32 }
 0x133   : > { %vm807_vm7 = vmor %vm805_vm6, %vm806_vm5 }
 0x134   : > { %v798_v36 = vsel %vm797_vm4, %v1721_v26, %v794_v33  ;;  %v801_v37 = vmul.f32 %v1723_v32, %v800_v34 }
 0x135   : > { %v809_v39 = vmul.f32 %v798_v36, %v775_v13 }
 0x136   : > { %v802_v40 = vmul.f32 0.5, %v801_v37 }
 0x137   : > { %v814_v41 = vmul.f32 %v1716_v35, %v809_v39 }
 0x138   : > { %v803_v42 = vsub.f32 1.5, %v802_v40 }
 0x139   : > { %v819_v43 = vadd.f32 %v1717_v38, %v814_v41 }
 0x13a   : > { %v804_v44 = vmul.f32 %v1723_v32, %v803_v42 }
 0x13b   : > { %821 = vst.msk [vmem:[%s1995_s11] sm:$0xff] %vm759_vm0, %v819_v43 }
 0x13c   : > { %v808_v45 = vsel %vm807_vm7, %v1723_v32, %v804_v44 }
 0x13d   : > { %v810_v46 = vmul.f32 %v808_v45, %v776_v18 }
 0x13f   : > { %v815_v47 = vmul.f32 %v1716_v35, %v810_v46 }
 0x141   : > { %v820_v48 = vadd.f32 %v1717_v38, %v815_v47 }
 0x143   : > { %822 = vst.msk [vmem:[%s1995_s11 + $0x8] sm:$0xff] %vm759_vm0, %v820_v48 }
 0x144 PF: > { %v828_v49 = vld [vmem:[%s1938_s27 + $0x18] sm:$0xff]  ;;  %v827_v50 = vld [vmem:[%s1938_s27 + $0x10] sm:$0xff]  ;;  %v826_v51 = vld [vmem:[%s1938_s27 + $0x8] sm:$0xff]  ;;  %vm833_vm8 = vcmask 261120   ;;  %s2215_s24 = scalar_lea.vmem %s2170_s5, %s1928_s29  ;;  %s1804_s23 = smov 64   ;;  %vm875_vm9 = vcmask 130048  }
 0x145   : > { %852 = vmatpush.msra.mxu0 %v828_v49  ;;  %v825_v52 = vld [vmem:[%s1938_s27] sm:$0xff]  ;;  %s1803_s27 = smov 96   ;;  %s1805_s30 = smov 80   ;;  %vm929_vm10 = vcmask 64512   ;;  %v864_v6 = vld [vmem:[%s1946_s21 + $0x8] sm:$0xff]  ;;  %vm1331_vm2 = vcmask 523264  }
 0x146   : > { %v2017_v53 = vld [vmem:[%s1995_s11] sm:$0xff]  ;;  %s1806_s3 = smov 112   ;;  %s2216_s15 = sld [smem:[#allocation8_spill]] }
 0x147   : > { %853 = vmatpush.msra.mxu0 %v827_v50  ;;  %v1724_v55 = vld [vmem:[%s2215_s24] ss:$0 sm:$0xff]  ;;  %s2217_s6 = scalar_lea.vmem %s2172_s7, %s1928_s29  ;;  %s2218_s19 = scalar_lea.vmem %s2173_s8, %s1928_s29 }
 0x148   : > { %v863_v2 = vld [vmem:[%s1946_s21] sm:$0xff]  ;;  %s1807_s21 = smov 48   ;;  %s2219_s17 = scalar_lea.vmem %s2174_s9, %s1928_s29 }
 0x149   : > { %854 = vmatpush.msra.mxu0 %v826_v51  ;;  %s2220_s24 = sld [smem:[#allocation16_spill]] }
 0x14a   : > { %v2022_v54 = vld [vmem:[%s1995_s11 + $0x8] sm:$0xff] }
 0x14b   : > { %855 = vmatpush.msra.mxu0 %v825_v52 }
 0x14c   : > { %1641 = vmatmul.msk.f32.vlgmr.msra.gmra.mxu0 %vm833_vm8, %v2017_v53  ;;  %v866_v21 = vld [vmem:[%s2216_s15 + $0x8] sm:$0xff]  ;;  %v865_v31 = vld [vmem:[%s2216_s15] sm:$0xff]  ;;  %v868_v51 = vld [vmem:[%s2216_s15 + $0x18] sm:$0xff] }
 0x154   : > { %1642 = vmatmul.msk.f32.gmra.mxu0 %vm833_vm8, %v2022_v54 }
 0x1c9   : > { %v857_v56 = vpop.f32.mrf.mxu0 }
 0x1ca   : > { %v2031_v57 = vadd.f32 %v1724_v55, %v857_v56 }
 0x1cc   : > { %873 = vrot.lane.b32.xlu0 %v2031_v57, %s1803_s27  ;;  %v870_v62 = vmul.f32 0.25, %v2031_v57 }
 0x1d1   : > { %v860_v58 = vpop.f32.mrf.mxu0 }
 0x1d2   : > { %v2034_v59 = vadd.f32 %v1724_v55, %v860_v58 }
 0x1d4   : > { %902 = vrot.lane.b32.xlu0 %v2034_v59, %s1803_s27  ;;  %v871_v60 = vmul.f32 0.25, %v2034_v59  ;;  %s2221_s27 = scalar_lea.vmem %s2220_s24, %s1928_s29 }
 0x1dc   : > { %952 = vrot.lane.b32.xlu0 %v2031_v57, %s1804_s23 }
 0x1e4   : > { %978 = vrot.lane.b32.xlu0 %v2034_v59, %s1804_s23 }
 0x1ec   : > { %1068 = vrot.lane.b32.xlu0 %v2034_v59, %s1805_s30 }
 0x1f4   : > { %1066 = vrot.lane.b32.xlu0 %v871_v60, %s1806_s3 }
 0x23e   : > { %v874_v61 = vpop.permute.xlu0 %873 }
 0x23f   : > { %1643 = vmatpush.xpose.msk.msra.mxu1 %vm875_vm9, %v874_v61 }
 0x242   : > { %1644 = vmatmul.msk.f32.vlgmr.msra.gmra.mxu1 %vm875_vm9, %v870_v62 }
 0x243   : > { %1024 = vmatpush.msrb.mxu1 %v866_v21 }
 0x245   : > { %1025 = vmatpush.msrb.mxu1 %v865_v31  ;;  %v1264_v31 = vld [vmem:[%s1968_s1] sm:$0xff] }
 0x246   : > { %v903_v63 = vpop.permute.xlu0 %902 }
 0x247   : > { %1645 = vmatpush.xpose.msk.msrb.mxu0 %vm875_vm9, %v903_v63 }
 0x24a   : > { %1646 = vmatmul.msk.f32.vlgmr.msrb.gmra.mxu0 %vm875_vm9, %v871_v60 }
 0x24e   : > { %v953_v0 = vpop.permute.xlu0 %952 }
 0x24f   : > { %973 = vmatpush.msra.mxu3 %v953_v0 }
 0x256   : > { %v979_v1 = vpop.permute.xlu0 %978 }
 0x257   : > { %999 = vmatpush.msrb.mxu3 %v979_v1  ;;  %v1725_v1 = vld [vmem:[%s2217_s6] ss:$0 sm:$0xff] }
 0x25e   : > { %v1069_v26 = vpop.permute.xlu0 %1068 }
 0x266   : > { %v1067_v30 = vpop.permute.xlu0 %1066 }
 0x2bf   : > { %v898_v3 = vpop.f32.mrf.mxu1 }
 0x2c0   : > { %v899_v4 = vadd.f32 %v898_v3, %v863_v2 }
 0x2c2   : > { %v930_v5 = vsel %vm929_vm10, %v899_v4, -inf }
 0x2c3   : > { %931 = vmax.xlane.f32.xlu1 %v930_v5 }
 0x2c7   : > { %v926_v7 = vpop.f32.mrf.mxu0 }
 0x2c8   : > { %v927_v8 = vadd.f32 %v926_v7, %v864_v6 }
 0x2ca   : > { %v933_v9 = vsel %vm929_vm10, %v927_v8, -inf }
 0x2cb   : > { %934 = vmax.xlane.f32.xlu1 %v933_v9 }
 0x2e4   : > { %1040 = vrot.lane.b32.xlu1 %v2031_v57, %s1805_s30 }
 0x336   : > { %v932_v10 = vpop.xlane.xlu1 %931 }
 0x337   : > { %v936_v11 = vsub.f32 %v899_v4, %v932_v10 }
 0x339   : > { %v938_v12 = vmul.f32 1.442695, %v936_v11 }
 0x33b   : > { %1732 = vpow2.f32 %v938_v12 }
 0x33e   : > { %v935_v13 = vpop.xlane.xlu1 %934 }
 0x33f   : > { %v937_v14 = vsub.f32 %v927_v8, %v935_v13  ;;  %v1808_v13 = vmov 32.0  }
 0x341   : > { %v1733_v15 = vpop.eup %1732  ;;  %v940_v16 = vmul.f32 1.442695, %v937_v14 }
 0x342   : > { %v942_v17 = vsel %vm929_vm10, %v1733_v15, 0.0 }
 0x343   : > { %1734 = vpow2.f32 %v940_v16  ;;  %943 = vadd.xlane.f32.xlu2 %v942_v17 }
 0x349   : > { %v1735_v18 = vpop.eup %1734 }
 0x34a   : > { %v945_v19 = vsel %vm929_vm10, %v1735_v18, 0.0 }
 0x34b   : > { %946 = vadd.xlane.f32.xlu2 %v945_v19 }
 0x356   : > { %v1041_v20 = vpop.permute.xlu1 %1040 }
 0x357   : > { %1651 = vmatpush.xpose.msk.msra.mxu2 %vm875_vm9, %v1041_v20 }
 0x363   : > { %1038 = vrot.lane.b32.xlu2 %v870_v62, %s1806_s3  ;;  %v867_v62 = vld [vmem:[%s2216_s15 + $0x10] sm:$0xff] }
 0x3b6   : > { %v944_v22 = vpop.xlane.xlu2 %943 }
 0x3b7   : > { %1736 = vrcp.f32 %v944_v22 }
 0x3bd   : > { %v1737_v23 = vpop.eup %1736 }
 0x3be   : > { %v947_v24 = vpop.xlane.xlu2 %946  ;;  %v950_v25 = vmul.f32 %v1737_v23, %v1733_v15 }
 0x3bf   : > { %1738 = vrcp.f32 %v947_v24 }
 0x3c0   : > { %1647 = vmatmul.msk.f32.vlgmr.msra.gmra.mxu3 %vm929_vm10, %v950_v25 }
 0x3c1   : > { %1653 = vmatpush.xpose.msk.msra.mxu3 %vm875_vm9, %v1069_v26 }
 0x3c5   : > { %v1739_v27 = vpop.eup %1738 }
 0x3c6   : > { %v1039_v28 = vpop.permute.xlu2 %1038  ;;  %v951_v29 = vmul.f32 %v1739_v27, %v1735_v18 }
 0x3c7   : > { %1652 = vmatmul.msk.f32.vlgmr.msra.gmra.mxu2 %vm875_vm9, %v1039_v28  ;;  %v1267_v28 = vld [vmem:[%s1968_s1 + $0x18] sm:$0xff] }
 0x3c8   : > { %1648 = vmatmul.msk.f32.vlgmr.msrb.gmra.mxu3 %vm929_vm10, %v951_v29  ;;  %1290 = vmatpush.msra.mxu1 %v1267_v28  ;;  %v1266_v29 = vld [vmem:[%s1968_s1 + $0x10] sm:$0xff]  ;;  %v1729_v28 = vld [vmem:[%s738_s20] ss:$0 sm:$0xff] }
 0x3c9   : > { %1188 = vmatpush.msrb.mxu3 %v868_v51 }
 0x3ca   : > { %1291 = vmatpush.msra.mxu1 %v1266_v29 }
 0x3cb   : > { %1189 = vmatpush.msrb.mxu3 %v867_v62 }
 0x3d0   : > { %1654 = vmatmul.msk.f32.vlgmr.msra.gmra.mxu3 %vm875_vm9, %v1067_v30  ;;  %v1265_v30 = vld [vmem:[%s1968_s1 + $0x8] sm:$0xff] }
 0x3d1   : > { %1292 = vmatpush.msra.mxu1 %v1265_v30 }
 0x3d3   : > { %1293 = vmatpush.msra.mxu1 %v1264_v31 }
 0x443   : > { %v975_v32 = vpop.f32.mrf.mxu3 }
 0x444   : > { %1649 = vmatmul.msk.f32.vlgmr.msrb.gmra.mxu1 %vm875_vm9, %v975_v32 }
 0x44a   : > { %v1063_v33 = vpop.f32.mrf.mxu2 }
 0x44b   : > { %v1064_v34 = vadd.f32 %v1063_v33, %v863_v2  ;;  %v1001_v35 = vpop.f32.mrf.mxu3 }
 0x44c   : > { %1650 = vmatmul.msk.f32.gmra.mxu1 %vm875_vm9, %v1001_v35 }
 0x44d   : > { %v1094_v36 = vsel %vm929_vm10, %v1064_v34, -inf }
 0x44e   : > { %1095 = vmax.xlane.f32.xlu2 %v1094_v36 }
 0x453   : > { %v1091_v37 = vpop.f32.mrf.mxu3 }
 0x454   : > { %v1092_v38 = vadd.f32 %v1091_v37, %v864_v6 }
 0x456   : > { %v1097_v39 = vsel %vm929_vm10, %v1092_v38, -inf }
 0x457   : > { %1098 = vmax.xlane.f32.xlu1 %v1097_v39 }
 0x466   : > { %1116 = vrot.lane.b32.xlu2 %v2031_v57, %s1807_s21 }
 0x4c1   : > { %v1096_v40 = vpop.xlane.xlu2 %1095  ;;  %v1027_v0 = vpop.f32.mrf.mxu1 }
 0x4c2   : > { %v1100_v41 = vsub.f32 %v1064_v34, %v1096_v40  ;;  %v1036_v2 = vadd.f32 %v1725_v1, %v1027_v0  ;;  %v1324_v0 = vld [vmem:[%s1982_s4 + $0x28] sm:$0xff] }
 0x4c4   : > { %v1102_v42 = vmul.f32 1.442695, %v1100_v41 }
 0x4c6   : > { %1740 = vpow2.f32 %v1102_v42 }
 0x4c9   : > { %v1117_v43 = vpop.permute.xlu2 %1116  ;;  %v1030_v6 = vpop.f32.mrf.mxu1 }
 0x4ca   : > { %1137 = vmatpush.msrb.mxu2 %v1117_v43  ;;  %v1099_v44 = vpop.xlane.xlu1 %1098  ;;  %v1037_v8 = vadd.f32 %v1725_v1, %v1030_v6  ;;  %v1323_v1 = vld [vmem:[%s1982_s4 + $0x20] sm:$0xff] }
 0x4cb   : > { %v1101_v45 = vsub.f32 %v1092_v38, %v1099_v44  ;;  %v1728_v6 = vld [vmem:[%s2221_s27] ss:$0 sm:$0xff] }
 0x4cc   : > { %v1741_v46 = vpop.eup %1740 }
 0x4cd   : > { %v1104_v47 = vmul.f32 1.442695, %v1101_v45  ;;  %v1106_v48 = vsel %vm929_vm10, %v1741_v46, 0.0 }
 0x4ce   : > { %1107 = vadd.xlane.f32.xlu0 %v1106_v48 }
 0x4cf   : > { %1742 = vpow2.f32 %v1104_v47 }
 0x4d5   : > { %v1743_v49 = vpop.eup %1742 }
 0x4d6   : > { %v1109_v50 = vsel %vm929_vm10, %v1743_v49, 0.0 }
 0x4d7   : > { %1110 = vadd.xlane.f32.xlu1 %v1109_v50  ;;  %v1727_v50 = vld [vmem:[%s2219_s17] ss:$0 sm:$0xff] }
 0x4e2   : > { %1142 = vrot.lane.b32.xlu0 %v2034_v59, %s1807_s21 }
 0x541   : > { %v1108_v52 = vpop.xlane.xlu0 %1107 }
 0x542   : > { %1744 = vrcp.f32 %v1108_v52 }
 0x548   : > { %v1745_v55 = vpop.eup %1744 }
 0x549   : > { %v1114_v56 = vmul.f32 %v1745_v55, %v1741_v46  ;;  %v1726_v46 = vld [vmem:[%s2218_s19] ss:$0 sm:$0xff] }
 0x54a   : > { %v1111_v57 = vpop.xlane.xlu1 %1110 }
 0x54b   : > { %1746 = vrcp.f32 %v1111_v57  ;;  %1655 = vmatmul.msk.f32.vlgmr.msrb.gmra.mxu2 %vm929_vm10, %v1114_v56 }
 0x54c   : > { %1748 = vrcp.f32 %v1808_v13 }
 0x551   : > { %v1747_v58 = vpop.eup %1746 }
 0x552   : > { %v1115_v60 = vmul.f32 %v1747_v58, %v1743_v49  ;;  %v1749_v14 = vpop.eup %1748 }
 0x553   : > { %v1210_v15 = vmul.f32 32.0, %v1749_v14  ;;  %vm1214_vm11 = vweird.f32 %v1749_v14 }
 0x554   : > { %v1143_v61 = vpop.permute.xlu0 %1142 }
 0x555   : > { %1163 = vmatpush.msra.mxu0 %v1143_v61  ;;  %v1211_v16 = vsub.f32 1.0, %v1210_v15 }
 0x556   : > { %1656 = vmatmul.msk.f32.vlgmr.msra.gmra.mxu0 %vm929_vm10, %v1115_v60 }
 0x557   : > { %v1212_v17 = vmul.f32 %v1749_v14, %v1211_v16 }
 0x5ce   : > { %v1139_v59 = vpop.f32.mrf.mxu2 }
 0x5cf   : > { %1657 = vmatmul.msk.f32.vlgmr.msrb.gmra.mxu3 %vm875_vm9, %v1139_v59  ;;  %v1326_v59 = vld [vmem:[%s1982_s4 + $0x38] sm:$0xff] }
 0x5d0   : > { %1346 = vmatpush.msra.mxu2 %v1326_v59 }
 0x5d3   : > { %v1165_v63 = vpop.f32.mrf.mxu0 }
 0x5d7   : > { %1658 = vmatmul.msk.f32.gmra.mxu3 %vm875_vm9, %v1165_v63  ;;  %v1325_v63 = vld [vmem:[%s1982_s4 + $0x30] sm:$0xff] }
 0x5d8   : > { %1347 = vmatpush.msra.mxu2 %v1325_v63  ;;  %v1730_v63 = vld [vmem:[%s741_s2] ss:$0 sm:$0xff] }
 0x5da   : > { %1348 = vmatpush.msra.mxu2 %v1324_v0 }
 0x5dc   : > { %1349 = vmatpush.msra.mxu2 %v1323_v1  ;;  %v1731_v1 = vld [vmem:[%s744_s10] ss:$0 sm:$0xff] }
 0x652   : > { %v1191_v3 = vpop.f32.mrf.mxu3 }
 0x653   : > { %v1197_v4 = vadd.f32 %v1191_v3, %v1036_v2  ;;  %v1322_v2 = vld [vmem:[%s1982_s4 + $0x18] sm:$0xff]  ;;  %v1321_v3 = vld [vmem:[%s1982_s4 + $0x10] sm:$0xff] }
 0x654   : > { %1350 = vmatpush.msra.mxu2 %v1322_v2 }
 0x655   : > { %v1199_v5 = vadd.f32 %v1197_v4, %v2017_v53  ;;  %v1213_v53 = vadd.f32 %v1749_v14, %v1212_v17  ;;  %v1320_v4 = vld [vmem:[%s1982_s4 + $0x8] sm:$0xff] }
 0x656   : > { %1351 = vmatpush.msra.mxu2 %v1321_v3 }
 0x657   : > { %v1203_v7 = vsel %vm833_vm8, %v1199_v5, 0.0  ;;  %v2086_v18 = vsel %vm1214_vm11, %v1749_v14, %v1213_v53 }
 0x658   : > { %1204 = vadd.xlane.f32.xlu1 %v1203_v7  ;;  %1352 = vmatpush.msra.mxu2 %v1320_v4 }
 0x65a   : > { %v1194_v9 = vpop.f32.mrf.mxu3 }
 0x65b   : > { %v1198_v10 = vadd.f32 %v1194_v9, %v1037_v8 }
 0x65d   : > { %v1200_v11 = vadd.f32 %v1198_v10, %v2022_v54 }
 0x65f   : > { %v1206_v12 = vsel %vm833_vm8, %v1200_v11, 0.0 }
 0x660   : > { %1207 = vadd.xlane.f32.xlu1 %v1206_v12 }
 0x6cb   : > { %v1205_v19 = vpop.xlane.xlu1 %1204 }
 0x6cc   : > { %v1216_v20 = vmul.f32 %v2086_v18, %v1205_v19 }
 0x6ce   : > { %v1218_v54 = vsub.f32 %v1199_v5, %v1216_v20  ;;  %v1319_v5 = vld [vmem:[%s1982_s4] sm:$0xff] }
 0x6cf   : > { %1353 = vmatpush.msra.mxu2 %v1319_v5 }
 0x6d0   : > { %v1220_v21 = vmul.f32 %v1218_v54, %v1218_v54 }
 0x6d2   : > { %v1222_v22 = vsel %vm833_vm8, %v1220_v21, 0.0 }
 0x6d3   : > { %1223 = vadd.xlane.f32.xlu2 %v1222_v22  ;;  %v1208_v23 = vpop.xlane.xlu1 %1207 }
 0x6d4   : > { %v1217_v24 = vmul.f32 %v2086_v18, %v1208_v23 }
 0x6d6   : > { %v1219_v25 = vsub.f32 %v1200_v11, %v1217_v24 }
 0x6d8   : > { %v1221_v26 = vmul.f32 %v1219_v25, %v1219_v25 }
 0x6da   : > { %v1225_v27 = vsel %vm833_vm8, %v1221_v26, 0.0 }
 0x6db   : > { %1226 = vadd.xlane.f32.xlu1 %v1225_v27 }
 0x746   : > { %v1224_v32 = vpop.xlane.xlu2 %1223 }
 0x747   : > { %v1228_v33 = vmul.f32 %v1224_v32, %v2086_v18 }
 0x749   : > { %v1230_v34 = vadd.f32 1e-12, %v1228_v33 }
 0x74b   : > { %1750 = vrsqrt.f32 %v1230_v34  ;;  %vm1238_vm13 = vweird.f32 %v1230_v34 }
 0x74e   : > { %v1227_v35 = vpop.xlane.xlu1 %1226 }
 0x74f   : > { %v1229_v36 = vmul.f32 %v1227_v35, %v2086_v18 }
 0x751   : > { %v1751_v37 = vpop.eup %1750  ;;  %v1231_v38 = vadd.f32 1e-12, %v1229_v36 }
 0x752   : > { %v1233_v39 = vmul.f32 %v1751_v37, %v1230_v34  ;;  %vm1239_vm12 = vweird.f32 %v1751_v37 }
 0x753   : > { %1752 = vrsqrt.f32 %v1231_v38  ;;  %vm1240_vm14 = vmor %vm1238_vm13, %vm1239_vm12  ;;  %vm1248_vm0 = vweird.f32 %v1231_v38 }
 0x754   : > { %v1234_v40 = vmul.f32 %v1751_v37, %v1233_v39 }
 0x756   : > { %v1235_v41 = vmul.f32 0.5, %v1234_v40 }
 0x758   : > { %v1236_v42 = vsub.f32 1.5, %v1235_v41 }
 0x759   : > { %v1753_v43 = vpop.eup %1752 }
 0x75a   : > { %v1237_v44 = vmul.f32 %v1751_v37, %v1236_v42  ;;  %v1243_v45 = vmul.f32 %v1753_v43, %v1231_v38  ;;  %vm1249_vm15 = vweird.f32 %v1753_v43 }
 0x75b   : > { %vm1250_vm1 = vmor %vm1248_vm0, %vm1249_vm15 }
 0x75c   : > { %v1241_v47 = vsel %vm1240_vm14, %v1751_v37, %v1237_v44  ;;  %v1244_v48 = vmul.f32 %v1753_v43, %v1243_v45 }
 0x75d   : > { %v1252_v49 = vmul.f32 %v1241_v47, %v1218_v54 }
 0x75e   : > { %v1245_v51 = vmul.f32 0.5, %v1244_v48 }
 0x75f   : > { %v1257_v52 = vmul.f32 %v1726_v46, %v1252_v49 }
 0x760   : > { %v1246_v55 = vsub.f32 1.5, %v1245_v51 }
 0x761   : > { %v1262_v56 = vadd.f32 %v1727_v50, %v1257_v52 }
 0x762   : > { %v1247_v57 = vmul.f32 %v1753_v43, %v1246_v55 }
 0x763   : > { %1659 = vmatmul.msk.f32.vlgmr.msra.gmra.mxu1 %vm833_vm8, %v1262_v56 }
 0x764   : > { %v1251_v58 = vsel %vm1250_vm1, %v1753_v43, %v1247_v57 }
 0x765   : > { %v1253_v60 = vmul.f32 %v1251_v58, %v1219_v25 }
 0x767   : > { %v1258_v61 = vmul.f32 %v1726_v46, %v1253_v60 }
 0x769   : > { %v1263_v62 = vadd.f32 %v1727_v50, %v1258_v61 }
 0x76b   : > { %1660 = vmatmul.msk.f32.gmra.mxu1 %vm833_vm8, %v1263_v62 }
 0x7e0   : > { %v1295_v7 = vpop.f32.mrf.mxu1 }
 0x7e1   : > { %v1296_v8 = vadd.f32 %v1728_v6, %v1295_v7 }
 0x7e3   : > { %v1303_v9 = vmul.f32 0.044715, %v1296_v8  ;;  %v1301_v21 = vmul.f32 0.5, %v1296_v8 }
 0x7e5   : > { %v1305_v10 = vmul.f32 %v1303_v9, %v1296_v8 }
 0x7e7   : > { %v1307_v11 = vmul.f32 %v1305_v10, %v1296_v8 }
 0x7e8   : > { %v1298_v12 = vpop.f32.mrf.mxu1 }
 0x7e9   : > { %v1309_v13 = vadd.f32 %v1307_v11, %v1296_v8  ;;  %v1299_v14 = vadd.f32 %v1728_v6, %v1298_v12 }
 0x7eb   : > { %v1311_v15 = vmul.f32 0.7978846, %v1309_v13  ;;  %v1304_v16 = vmul.f32 0.044715, %v1299_v14  ;;  %v1302_v25 = vmul.f32 0.5, %v1299_v14 }
 0x7ed   : > { %1754 = vtanh.f32 %v1311_v15  ;;  %v1306_v17 = vmul.f32 %v1304_v16, %v1299_v14 }
 0x7ef   : > { %v1308_v53 = vmul.f32 %v1306_v17, %v1299_v14 }
 0x7f1   : > { %v1310_v19 = vadd.f32 %v1308_v53, %v1299_v14 }
 0x7f3   : > { %v1755_v20 = vpop.eup %1754  ;;  %v1312_v54 = vmul.f32 0.7978846, %v1310_v19 }
 0x7f4   : > { %v1315_v22 = vadd.f32 1.0, %v1755_v20 }
 0x7f5   : > { %1756 = vtanh.f32 %v1312_v54 }
 0x7f6   : > { %v1317_v23 = vmul.f32 %v1315_v22, %v1301_v21 }
 0x7f8   : > { %1661 = vmatmul.msk.f32.vlgmr.msra.gmra.mxu2 %vm1331_vm2, %v1317_v23 }
 0x7fb   : > { %v1757_v24 = vpop.eup %1756 }
 0x7fc   : > { %v1316_v26 = vadd.f32 1.0, %v1757_v24 }
 0x7fe   : > { %v1318_v27 = vmul.f32 %v1316_v26, %v1302_v25 }
 0x800   : > { %1662 = vmatmul.msk.f32.gmra.mxu2 %vm1331_vm2, %v1318_v27 }
 0x87b   : > { %v1355_v29 = vpop.f32.mrf.mxu2 }
 0x87c   : > { %v1356_v30 = vadd.f32 %v1729_v28, %v1355_v29 }
 0x87e   : > { %v1361_v31 = vadd.f32 %v1356_v30, %v1262_v56 }
 0x880   : > { %v1365_v32 = vsel %vm833_vm8, %v1361_v31, 0.0 }
 0x881   : > { %1366 = vadd.xlane.f32.xlu0 %v1365_v32 }
 0x883   : > { %v1358_v33 = vpop.f32.mrf.mxu2 }
 0x884   : > { %v1359_v34 = vadd.f32 %v1729_v28, %v1358_v33 }
 0x886   : > { %v1362_v35 = vadd.f32 %v1359_v34, %v1263_v62 }
 0x888   : > { %v1368_v36 = vsel %vm833_vm8, %v1362_v35, 0.0 }
 0x889   : > { %1369 = vadd.xlane.f32.xlu1 %v1368_v36 }
 0x8f4   : > { %v1367_v37 = vpop.xlane.xlu0 %1366 }
 0x8f5   : > { %v1371_v38 = vmul.f32 %v1367_v37, %v2086_v18 }
 0x8f7   : > { %v1373_v39 = vsub.f32 %v1361_v31, %v1371_v38 }
 0x8f9   : > { %v1375_v40 = vmul.f32 %v1373_v39, %v1373_v39 }
 0x8fb   : > { %v1377_v41 = vsel %vm833_vm8, %v1375_v40, 0.0 }
 0x8fc   : > { %1378 = vadd.xlane.f32.xlu1 %v1377_v41  ;;  %v1370_v42 = vpop.xlane.xlu1 %1369 }
 0x8fd   : > { %v1372_v43 = vmul.f32 %v1370_v42, %v2086_v18 }
 0x8ff   : > { %v1374_v44 = vsub.f32 %v1362_v35, %v1372_v43 }
 0x901   : > { %v1376_v45 = vmul.f32 %v1374_v44, %v1374_v44 }
 0x903   : > { %v1380_v46 = vsel %vm833_vm8, %v1376_v45, 0.0 }
 0x904   : > { %1381 = vadd.xlane.f32.xlu1 %v1380_v46 }
 0x96f   : > { %v1379_v47 = vpop.xlane.xlu1 %1378 }
 0x970   : > { %v1383_v48 = vmul.f32 %v1379_v47, %v2086_v18 }
 0x972   : > { %v1385_v49 = vadd.f32 1e-12, %v1383_v48 }
 0x974   : > { %1758 = vrsqrt.f32 %v1385_v49  ;;  %vm1393_vm4 = vweird.f32 %v1385_v49 }
 0x977   : > { %v1382_v50 = vpop.xlane.xlu1 %1381 }
 0x978   : > { %v1384_v51 = vmul.f32 %v1382_v50, %v2086_v18 }
 0x97a   : > { %v1759_v52 = vpop.eup %1758  ;;  %v1386_v55 = vadd.f32 1e-12, %v1384_v51 }
 0x97b   : > { %v1388_v56 = vmul.f32 %v1759_v52, %v1385_v49  ;;  %vm1394_vm3 = vweird.f32 %v1759_v52 }
 0x97c   : > { %1760 = vrsqrt.f32 %v1386_v55  ;;  %vm1395_vm5 = vmor %vm1393_vm4, %vm1394_vm3  ;;  %vm1403_vm7 = vweird.f32 %v1386_v55 }
 0x97d   : > { %v1389_v57 = vmul.f32 %v1759_v52, %v1388_v56 }
 0x97f   : > { %v1390_v58 = vmul.f32 0.5, %v1389_v57 }
 0x981   : > { %v1391_v60 = vsub.f32 1.5, %v1390_v58 }
 0x982   : > { %v1761_v61 = vpop.eup %1760 }
 0x983   : > { %v1392_v62 = vmul.f32 %v1759_v52, %v1391_v60  ;;  %v1398_v59 = vmul.f32 %v1761_v61, %v1386_v55  ;;  %vm1404_vm6 = vweird.f32 %v1761_v61 }
 0x984   : > { %vm1405_vm9 = vmor %vm1403_vm7, %vm1404_vm6 }
 0x985   : > { %v1396_v18 = vsel %vm1395_vm5, %v1759_v52, %v1392_v62  ;;  %v1399_v0 = vmul.f32 %v1761_v61, %v1398_v59 }
 0x986   : > { %v1407_v2 = vmul.f32 %v1396_v18, %v1373_v39 }
 0x987   : > { %v1400_v3 = vmul.f32 0.5, %v1399_v0 }
 0x988   : > { %v1412_v4 = vmul.f32 %v1730_v63, %v1407_v2 }
 0x989   : > { %v1401_v5 = vsub.f32 1.5, %v1400_v3 }
 0x98a   : > { %v1417_v6 = vadd.f32 %v1731_v1, %v1412_v4 }
 0x98b   : > { %v1402_v7 = vmul.f32 %v1761_v61, %v1401_v5 }
 0x98c   : > { %1419 = vst.msk [vmem:[%s1995_s11] sm:$0xff] %vm833_vm8, %v1417_v6 }
 0x98d   : > { %v1406_v8 = vsel %vm1405_vm9, %v1761_v61, %v1402_v7 }
 0x98e   : > { %v1408_v9 = vmul.f32 %v1406_v8, %v1374_v44 }
 0x990   : > { %v1413_v10 = vmul.f32 %v1730_v63, %v1408_v9 }
 0x992   : > { %v1418_v11 = vadd.f32 %v1731_v1, %v1413_v10 }
 0x994   : > { %1420 = vst.msk [vmem:[%s1995_s11 + $0x8] sm:$0xff] %vm833_vm8, %v1418_v11 }
 0x995 PF: > { %s2223_s29 = sld [smem:[#allocation5_spill]] }
 0x996   : > { %s2224_s21 = sld [smem:[#allocation3_spill]] }
 0x997   : > { %s2225_s22 = sld [smem:[#allocation4_spill]] }
 0x998   : > { %s2226_s23 = sld [smem:[#allocation6_spill]] }
 0x999   : > { %s2227_s24 = sld [smem:[#allocation7_spill]] }
 0x99b   : > { %s26_s25 = sadd.s32 1, %s2223_s29  }
 0x99c   : > { %p23_p8 = scmp.ge.s32.totalorder %s26_s25, 6  }
 0x99e   :  { %25 = sbr.rel (!%p23_p8) target bundleno = 11 (0xb), region = 157 }

</bundles_post_ra>
